<compile_context>
chip_gen: v7x
topology: tpu7x:2x2x1
jax: 0.10.0
libtpu: 0.0.40
codegen_flags: <defaults>
</compile_context>

<pallas_src>
import math
from functools import partial

import jax
import jax.numpy as jnp
from jax import lax
from jax.experimental import pallas as pl
from jax.experimental.pallas import tpu as pltpu


# MXU operands / inter-kernel activations in bf16 (f32 accumulation).
# Elementwise epilogues stay f32 (correct on all generations; v5e has no bf16 VPU/EUP).
_MXU_DTYPE = jnp.bfloat16
_ACT_DTYPE = jnp.bfloat16
_MASK_DTYPE = jnp.bfloat16
_LN_EPS = 1e-5


# ----------------------------------------------------------------------------
# generation-aware VMEM / tiling budgets
# ----------------------------------------------------------------------------

def _tpu_vmem_bytes():
    try:
        info = pltpu.get_tpu_info()
        cap = getattr(info, "vmem_capacity_bytes", None)
        if cap:
            return int(cap)
    except Exception:
        pass
    return 64 << 20   # conservative default (v7x per-TensorCore)


_VMEM_CAP = _tpu_vmem_bytes()
# explicit scoped-VMEM limit (v5e default is only 16 MiB, v7x 32 MiB); keep headroom.
_VMEM_LIMIT = int(min((_VMEM_CAP * 3) // 4, 64 << 20))
# budget for one (tk, N) weight block in the untiled-N fused kernels
_WEIGHT_BLOCK_BUDGET = max(1 << 20, _VMEM_CAP // 16)

if _VMEM_CAP >= (100 << 20):          # v5e / v6e (128 MiB VMEM)
    _TM_PREF, _TN_PREF, _TK_PREF = 512, 256, 512
else:                                  # v7x (64 MiB per TensorCore)
    _TM_PREF, _TN_PREF, _TK_PREF = 256, 256, 512


def _pick_tile(dim, pref, align):
    """Largest tile <= pref that divides `dim` and is a multiple of `align`;
    falls back to the full dim (always legal for a BlockSpec)."""
    if dim <= pref:
        return dim
    t = (pref // align) * align
    while t >= align:
        if dim % t == 0:
            return t
        t -= align
    return dim


def _k_tile_for(K, N, elem_bytes=2):
    """K tile for kernels whose N is untiled: bound the (tk, N) bf16 weight block
    so double-buffered blocks stay inside the generation's VMEM budget."""
    per_row = max(elem_bytes * N, 1)
    pref = (_WEIGHT_BLOCK_BUDGET // per_row) // 128 * 128
    pref = max(128, min(1024, pref))
    return _pick_tile(K, pref, 128)


def _compiler_params(dims):
    return pltpu.CompilerParams(dimension_semantics=dims,
                                vmem_limit_bytes=_VMEM_LIMIT)


# ----------------------------------------------------------------------------
# Pallas kernels
# ----------------------------------------------------------------------------

def _gelu_f32(y):
    # exact GELU (erf-based, matches torch.nn.GELU default), f32 on VPU/EUP
    return 0.5 * y * (1.0 + lax.erf(y * (1.0 / math.sqrt(2.0))))


def _linear_kernel(x_ref, w_ref, b_ref, o_ref, acc_ref, *, gelu):
    # (tm, tk) @ (tk, tn) accumulated over the K grid axis. Operands are bf16.
    k = pl.program_id(2)

    @pl.when(k == 0)
    def _():
        acc_ref[...] = jnp.zeros_like(acc_ref)

    acc_ref[...] += jnp.dot(x_ref[...], w_ref[...],
                            preferred_element_type=jnp.float32)

    @pl.when(k == pl.num_programs(2) - 1)
    def _():
        y = acc_ref[...] + b_ref[...].astype(jnp.float32)
        if gelu:
            y = _gelu_f32(y)
        o_ref[...] = y.astype(o_ref.dtype)


def linear_pallas(x, w, b, gelu=False):
    x = x.astype(_MXU_DTYPE)
    w = w.astype(_MXU_DTYPE)          # no-op: weights pre-cast at init
    M, K = x.shape
    N = w.shape[1]
    tm = _pick_tile(M, _TM_PREF, 8)
    tn = _pick_tile(N, _TN_PREF, 128)
    tk = _pick_tile(K, _TK_PREF, 128)
    grid = (M // tm, N // tn, K // tk)
    return pl.pallas_call(
        partial(_linear_kernel, gelu=gelu),
        grid=grid,
        in_specs=[
            pl.BlockSpec((tm, tk), lambda i, j, k: (i, k)),
            pl.BlockSpec((tk, tn), lambda i, j, k: (k, j)),
            pl.BlockSpec((1, tn), lambda i, j, k: (0, j)),
        ],
        out_specs=pl.BlockSpec((tm, tn), lambda i, j, k: (i, j)),
        out_shape=jax.ShapeDtypeStruct((M, N), _ACT_DTYPE),
        scratch_shapes=[pltpu.VMEM((tm, tn), jnp.float32)],
        compiler_params=_compiler_params(("parallel", "parallel", "arbitrary")),
    )(x, w, b)


def _qkv_linear_kernel(x_ref, w_ref, b_ref, q_ref, kv_ref, acc_ref, *, d_model):
    # Fused QKV projection: x @ [Wq|Wk|Wv]; split accumulator into Q and
    # packed KV outputs in VMEM (no HBM slice copies). 1/sqrt(dh) is already
    # folded into Wq / bq at init, so Q comes out pre-scaled.
    k = pl.program_id(1)

    @pl.when(k == 0)
    def _():
        acc_ref[...] = jnp.zeros_like(acc_ref)

    acc_ref[...] += jnp.dot(x_ref[...], w_ref[...],
                            preferred_element_type=jnp.float32)

    @pl.when(k == pl.num_programs(1) - 1)
    def _():
        y = acc_ref[...] + b_ref[...].astype(jnp.float32)
        q_ref[...] = y[:, :d_model].astype(q_ref.dtype)
        kv_ref[...] = y[:, d_model:].astype(kv_ref.dtype)


def qkv_linear_pallas(x, w, b, d_model):
    x = x.astype(_MXU_DTYPE)
    w = w.astype(_MXU_DTYPE)
    M, K = x.shape
    N = w.shape[1]                      # == 3 * d_model
    tm = _pick_tile(M, _TM_PREF, 8)
    tk = _k_tile_for(K, N)
    grid = (M // tm, K // tk)
    return pl.pallas_call(
        partial(_qkv_linear_kernel, d_model=d_model),
        grid=grid,
        in_specs=[
            pl.BlockSpec((tm, tk), lambda i, k: (i, k)),
            pl.BlockSpec((tk, N), lambda i, k: (k, 0)),
            pl.BlockSpec((1, N), lambda i, k: (0, 0)),
        ],
        out_specs=[
            pl.BlockSpec((tm, d_model), lambda i, k: (i, 0)),
            pl.BlockSpec((tm, 2 * d_model), lambda i, k: (i, 0)),
        ],
        out_shape=(jax.ShapeDtypeStruct((M, d_model), _ACT_DTYPE),
                   jax.ShapeDtypeStruct((M, 2 * d_model), _ACT_DTYPE)),
        scratch_shapes=[pltpu.VMEM((tm, N), jnp.float32)],
        compiler_params=_compiler_params(("parallel", "arbitrary")),
    )(x, w, b)


def _linear_res_ln_kernel(x_ref, w_ref, b_ref, r_ref, g_ref, bb_ref, o_ref,
                          acc_ref, *, gelu, eps):
    # Fused: y = act(x @ w + b); out = LayerNorm(res + y) * g + beta
    k = pl.program_id(1)

    @pl.when(k == 0)
    def _():
        acc_ref[...] = jnp.zeros_like(acc_ref)

    acc_ref[...] += jnp.dot(x_ref[...], w_ref[...],
                            preferred_element_type=jnp.float32)

    @pl.when(k == pl.num_programs(1) - 1)
    def _():
        y = acc_ref[...] + b_ref[...].astype(jnp.float32)
        if gelu:
            y = _gelu_f32(y)
        y = y + r_ref[...].astype(jnp.float32)
        mu = jnp.mean(y, axis=-1, keepdims=True)
        var = jnp.mean(jnp.square(y - mu), axis=-1, keepdims=True)
        y = (y - mu) * lax.rsqrt(var + eps)
        o_ref[...] = (y * g_ref[...].astype(jnp.float32)
                      + bb_ref[...].astype(jnp.float32)).astype(o_ref.dtype)


def linear_res_ln_pallas(x, w, b, res, ln_g, ln_b, gelu=False):
    x = x.astype(_MXU_DTYPE)
    w = w.astype(_MXU_DTYPE)
    res = res.astype(_ACT_DTYPE)
    M, K = x.shape
    N = w.shape[1]
    tm = _pick_tile(M, _TM_PREF, 8)
    tk = _k_tile_for(K, N)
    grid = (M // tm, K // tk)
    return pl.pallas_call(
        partial(_linear_res_ln_kernel, gelu=gelu, eps=_LN_EPS),
        grid=grid,
        in_specs=[
            pl.BlockSpec((tm, tk), lambda i, k: (i, k)),
            pl.BlockSpec((tk, N), lambda i, k: (k, 0)),
            pl.BlockSpec((1, N), lambda i, k: (0, 0)),
            pl.BlockSpec((tm, N), lambda i, k: (i, 0)),
            pl.BlockSpec((1, N), lambda i, k: (0, 0)),
            pl.BlockSpec((1, N), lambda i, k: (0, 0)),
        ],
        out_specs=pl.BlockSpec((tm, N), lambda i, k: (i, 0)),
        out_shape=jax.ShapeDtypeStruct((M, N), _ACT_DTYPE),
        scratch_shapes=[pltpu.VMEM((tm, N), jnp.float32)],
        compiler_params=_compiler_params(("parallel", "arbitrary")),
    )(x, w, b, res, ln_g.reshape(1, -1), ln_b.reshape(1, -1))


def _mha_kernel(*refs, head_n, has_mask):
    # One (batch, q-tile) slice per outer grid step; KV tiled along the last
    # (arbitrary) grid axis with online (flash-style) softmax. Heads are static
    # lane slices of the packed (tq, D) / (tkv, 2D) bf16 activations -- no head
    # transposes, no K transpose (dot_general contracts the last dims), the
    # 1/sqrt(dh) scale is pre-folded into Q, and the final store is one
    # lane-dense (tq, D) write (in-place normalize, no concatenate).
    if has_mask:
        q_ref, kv_ref, m_ref, o_ref, m_sc, l_sc, acc_sc = refs
    else:
        q_ref, kv_ref, o_ref, m_sc, l_sc, acc_sc = refs
        m_ref = None
    kv_step = pl.program_id(2)

    @pl.when(kv_step == 0)
    def _():
        m_sc[...] = jnp.full_like(m_sc, -1e30)
        l_sc[...] = jnp.zeros_like(l_sc)
        acc_sc[...] = jnp.zeros_like(acc_sc)

    q = q_ref[0]                           # (tq, D) bf16, pre-scaled by 1/sqrt(dh)
    kvt = kv_ref[0]                        # (tkv, 2D) bf16, packed [K | V]
    Tq, D = q.shape
    dh = D // head_n
    k_all = kvt[:, :D]
    v_all = kvt[:, D:]
    msk = m_ref[0].astype(jnp.float32) if has_mask else None

    for h in range(head_n):
        sl = slice(h * dh, (h + 1) * dh)
        # (tq, dh) x (tkv, dh) contracting the last dims -> (tq, tkv); no XLU transpose.
        s = lax.dot_general(q[:, sl], k_all[:, sl],
                            dimension_numbers=(((1,), (1,)), ((), ())),
                            preferred_element_type=jnp.float32)
        if has_mask:
            s = s * msk                    # multiplicative masking (accelbrainbase-style)
        m_prev = m_sc[h]                   # (tq, 1)
        m_new = jnp.maximum(m_prev, jnp.max(s, axis=-1, keepdims=True))
        alpha = jnp.exp(m_prev - m_new)
        p = jnp.exp(s - m_new)
        l_sc[h] = alpha * l_sc[h] + jnp.sum(p, axis=-1, keepdims=True)
        acc_sc[:, sl] = alpha * acc_sc[:, sl] + jnp.dot(
            p.astype(_MXU_DTYPE), v_all[:, sl], preferred_element_type=jnp.float32)
        m_sc[h] = m_new

    @pl.when(kv_step == pl.num_programs(2) - 1)
    def _():
        for h in range(head_n):
            sl = slice(h * dh, (h + 1) * dh)
            acc_sc[:, sl] = acc_sc[:, sl] * pl.reciprocal(l_sc[h], approx=True)  # EUP slot
        o_ref[0] = acc_sc[...].astype(o_ref.dtype)     # single lane-dense store


def attention_pallas(q, kv, mask, head_n):
    # q: (B, Sq, D)   kv: (B, Skv, 2D) packed [K|V]
    # mask: None (identity), or (1|B, Sq, Skv) -- never replicated over heads/batch.
    q = q.astype(_MXU_DTYPE)
    kv = kv.astype(_MXU_DTYPE)
    B, Sq, D = q.shape
    Skv = kv.shape[1]
    assert D % head_n == 0, "head_n must divide the model dimension"
    tq = _pick_tile(Sq, 256, 8)
    tkv = _pick_tile(Skv, 512, 128)
    grid = (B, Sq // tq, Skv // tkv)
    has_mask = mask is not None

    in_specs = [
        pl.BlockSpec((1, tq, D), lambda b, qi, ki: (b, qi, 0)),
        pl.BlockSpec((1, tkv, 2 * D), lambda b, qi, ki: (b, ki, 0)),
    ]
    args = [q, kv]
    if has_mask:
        mask = mask.astype(_MASK_DTYPE)
        if mask.shape[0] == 1:   # batch-invariant mask (e.g. default causal mask)
            in_specs.append(pl.BlockSpec((1, tq, tkv), lambda b, qi, ki: (0, qi, ki)))
        else:
            in_specs.append(pl.BlockSpec((1, tq, tkv), lambda b, qi, ki: (b, qi, ki)))
        args.append(mask)

    return pl.pallas_call(
        partial(_mha_kernel, head_n=head_n, has_mask=has_mask),
        grid=grid,
        in_specs=in_specs,
        out_specs=pl.BlockSpec((1, tq, D), lambda b, qi, ki: (b, qi, 0)),
        out_shape=jax.ShapeDtypeStruct((B, Sq, D), _ACT_DTYPE),
        scratch_shapes=[
            pltpu.VMEM((head_n, tq, 1), jnp.float32),   # running max
            pltpu.VMEM((head_n, tq, 1), jnp.float32),   # running denom
            pltpu.VMEM((tq, D), jnp.float32),           # per-head accumulators (packed)
        ],
        compiler_params=_compiler_params(("parallel", "parallel", "arbitrary")),
    )(*args)


# ----------------------------------------------------------------------------
# Transformer building blocks (glue in JAX, compute in Pallas)
# ----------------------------------------------------------------------------

def _prep_mask(mask, Sq, Skv):
    # mask arrives as (Bm, 1, 1, 1) or (Bm, 1, Sq, Skv); drop the head axis and
    # broadcast the sequence dims only -- batch stays at its natural size.
    if mask is None:
        return None
    m = mask.reshape(mask.shape[0], mask.shape[-2], mask.shape[-1])
    return jnp.broadcast_to(m, (m.shape[0], Sq, Skv)).astype(_MASK_DTYPE)


def self_attention_heads(x, mask, p, head_n):
    # returns pre-output-projection attention output, (B, S, D)
    B, S, D = x.shape
    q, kv = qkv_linear_pallas(x.reshape(B * S, D), p["w_qkv"], p["b_qkv"], D)
    q = q.reshape(B, S, D)
    kv = kv.reshape(B, S, 2 * D)
    return attention_pallas(q, kv, _prep_mask(mask, S, S), head_n)


def cross_attention_heads(x, enc, mask, p, head_n):
    B, S, D = x.shape
    Se = enc.shape[1]
    q = linear_pallas(x.reshape(B * S, D), p["wq"], p["bq"]).reshape(B, S, D)
    kv = linear_pallas(enc.reshape(B * Se, D), p["w_kv"], p["b_kv"]).reshape(B, Se, 2 * D)
    return attention_pallas(q, kv, _prep_mask(mask, S, Se), head_n)


def encoder_layer(x, mask, p, head_n):
    B, S, D = x.shape
    a = self_attention_heads(x, mask, p["attn"], head_n)
    # fused: out-proj + residual + LayerNorm
    x = linear_res_ln_pallas(a.reshape(B * S, D), p["attn"]["wo"], p["attn"]["bo"],
                             x.reshape(B * S, D), p["ln1_g"], p["ln1_b"]).reshape(B, S, D)
    # fused: FC + GELU + residual + LayerNorm
    x = linear_res_ln_pallas(x.reshape(B * S, D), p["fc_w"], p["fc_b"],
                             x.reshape(B * S, D), p["ln2_g"], p["ln2_b"],
                             gelu=True).reshape(B, S, D)
    return x


def decoder_layer(x, enc, dec_mask, enc_mask, p, head_n):
    B, S, D = x.shape
    a = self_attention_heads(x, dec_mask, p["self_attn"], head_n)
    x = linear_res_ln_pallas(a.reshape(B * S, D), p["self_attn"]["wo"], p["self_attn"]["bo"],
                             x.reshape(B * S, D), p["ln1_g"], p["ln1_b"]).reshape(B, S, D)
    c = cross_attention_heads(x, enc, enc_mask, p["cross_attn"], head_n)
    x = linear_res_ln_pallas(c.reshape(B * S, D), p["cross_attn"]["wo"], p["cross_attn"]["bo"],
                             x.reshape(B * S, D), p["ln2_g"], p["ln2_b"]).reshape(B, S, D)
    x = linear_res_ln_pallas(x.reshape(B * S, D), p["fc_w"], p["fc_b"],
                             x.reshape(B * S, D), p["ln3_g"], p["ln3_b"],
                             gelu=True).reshape(B, S, D)
    return x


def positional_encoding(seq_len, d, weight):
    pos = jnp.arange(seq_len, dtype=jnp.float32)[:, None]
    i = jnp.arange(d)[None, :]
    angle = pos / jnp.power(10000.0, (2 * (i // 2)).astype(jnp.float32) / d)
    pe = jnp.where(i % 2 == 0, jnp.sin(angle), jnp.cos(angle))
    return pe * weight


def transformer_encoder(x, mask, params, head_n, pe_weight):
    B, S, D = x.shape
    x = (x.astype(jnp.float32) + positional_encoding(S, D, pe_weight)[None]).astype(_ACT_DTYPE)
    for lp in params["layers"]:
        x = encoder_layer(x, mask, lp, head_n)
    return x


def transformer_decoder(x, enc, dec_mask, enc_mask, params, head_n, pe_weight):
    B, S, D = x.shape
    x = (x.astype(jnp.float32) + positional_encoding(S, D, pe_weight)[None]).astype(_ACT_DTYPE)
    for lp in params["layers"]:
        x = decoder_layer(x, enc, dec_mask, enc_mask, lp, head_n)
    if params["out_w"] is not None:
        x = linear_pallas(x.reshape(B * S, D), params["out_w"], params["out_b"])
        x = x.reshape(B, S, params["out_w"].shape[1])
    return x


# ----------------------------------------------------------------------------
# TransformerController.forward
# ----------------------------------------------------------------------------

def transformer_controller_forward(params, encoded_observed_arr, decoded_observed_arr,
                                   encoded_mask_arr=None, decoded_mask_arr=None,
                                   *, seq_len, head_n, pe_weight):
    # Default masks in the reference are all-ones (B,1,1,1): multiplicative
    # identity -> skipped entirely (no HBM mask traffic, no VPU mask pass).
    user_enc_mask = encoded_mask_arr
    user_dec_mask = decoded_mask_arr

    enc_x = encoded_observed_arr.astype(_ACT_DTYPE)
    dec_x = decoded_observed_arr.astype(_ACT_DTYPE)

    if params["enc_hidden_fc"] is not None:
        w, b = params["enc_hidden_fc"]
        Bq, S, Din = enc_x.shape
        enc_x = linear_pallas(enc_x.reshape(Bq * S, Din), w, b).reshape(Bq, S, w.shape[1])
    if params["dec_hidden_fc"] is not None:
        w, b = params["dec_hidden_fc"]
        Bq, S, Din = dec_x.shape
        dec_x = linear_pallas(dec_x.reshape(Bq * S, Din), w, b).reshape(Bq, S, w.shape[1])

    # mask construction -- exactly as in the PyTorch forward
    steps_arr = jnp.arange(seq_len)
    mask_arr = steps_arr.reshape(1, -1) <= steps_arr.reshape(-1, 1)             # (S, S) bool
    ones_arr = jnp.ones_like(steps_arr)
    seq_len_arr = ones_arr * seq_len
    batch_mask_arr = steps_arr.reshape(1, -1) < seq_len_arr.reshape(-1, 1)       # (S, S) bool
    _decoded_mask_arr = (batch_mask_arr & mask_arr[None, :, :])                  # (1, S, S) bool
    _decoded_mask_arr = _decoded_mask_arr[None, ...].astype(jnp.float32)         # (1, 1, S, S)
    _decoded_mask_arr = _decoded_mask_arr + 1e-08

    if user_dec_mask is None:
        # ones(B,1,1,1) + causal is identical per batch slice -> keep one copy.
        decoded_mask = 1.0 + _decoded_mask_arr                                   # (1, 1, S, S)
    else:
        decoded_mask = user_dec_mask.astype(jnp.float32) + _decoded_mask_arr     # (B, 1, S, S)

    encoder_mask = None if user_enc_mask is None else user_enc_mask.astype(jnp.float32)

    encoded_arr = transformer_encoder(enc_x, encoder_mask,
                                      params["encoder"], head_n, pe_weight)
    decoded_arr = transformer_decoder(dec_x, encoded_arr,
                                      decoded_mask, encoder_mask,
                                      params["decoder"], head_n, pe_weight)
    # output_nn is None by default in TransformerController -> return decoder output
    return decoded_arr.astype(jnp.float32)


# ----------------------------------------------------------------------------
# Deterministic parameter initialization (shapes implied by __init__).
# Weights are stored bf16 (single up-front cast); biases / LN params stay f32
# (consumed in the f32 epilogues). The 1/sqrt(dh) attention scale is folded
# into the Q projection weights/biases.
# ----------------------------------------------------------------------------

def _glorot(key, shape):
    fan_in, fan_out = shape
    limit = math.sqrt(6.0 / (fan_in + fan_out))
    return jax.random.uniform(key, shape, jnp.float32, -limit, limit)


def _init_self_attn(keys, d, head_n):
    dh = d // head_n
    scale = 1.0 / math.sqrt(dh)
    wq = _glorot(keys[0], (d, d)) * scale     # fold attention scale into Wq
    wk = _glorot(keys[1], (d, d))
    wv = _glorot(keys[2], (d, d))
    return {
        "w_qkv": jnp.concatenate([wq, wk, wv], axis=1).astype(_MXU_DTYPE),   # (d, 3d)
        "b_qkv": jnp.zeros((1, 3 * d), jnp.float32),   # (bq would be scaled too; zeros here)
        "wo": _glorot(keys[3], (d, d)).astype(_MXU_DTYPE),
        "bo": jnp.zeros((1, d), jnp.float32),
    }


def _init_cross_attn(keys, d, head_n):
    dh = d // head_n
    scale = 1.0 / math.sqrt(dh)
    wk = _glorot(keys[1], (d, d))
    wv = _glorot(keys[2], (d, d))
    return {
        "wq": (_glorot(keys[0], (d, d)) * scale).astype(_MXU_DTYPE),
        "bq": jnp.zeros((1, d), jnp.float32),
        "w_kv": jnp.concatenate([wk, wv], axis=1).astype(_MXU_DTYPE),        # (d, 2d)
        "b_kv": jnp.zeros((1, 2 * d), jnp.float32),
        "wo": _glorot(keys[3], (d, d)).astype(_MXU_DTYPE),
        "bo": jnp.zeros((1, d), jnp.float32),
    }


def init_params(key, depth_dim, hidden_dim, layer_n, head_n):
    d = hidden_dim if (hidden_dim is not None and hidden_dim != depth_dim) else depth_dim
    keys = iter(jax.random.split(key, 256))

    def nxt(n=1):
        return [next(keys) for _ in range(n)]

    if hidden_dim is not None and hidden_dim != depth_dim:
        enc_hidden_fc = (_glorot(nxt()[0], (depth_dim, hidden_dim)).astype(_MXU_DTYPE),
                         jnp.zeros((1, hidden_dim), jnp.float32))
        dec_hidden_fc = (_glorot(nxt()[0], (depth_dim, hidden_dim)).astype(_MXU_DTYPE),
                         jnp.zeros((1, hidden_dim), jnp.float32))
        dec_out_w = _glorot(nxt()[0], (hidden_dim, depth_dim)).astype(_MXU_DTYPE)
        dec_out_b = jnp.zeros((1, depth_dim), jnp.float32)
    else:
        enc_hidden_fc = None
        dec_hidden_fc = None
        dec_out_w = None
        dec_out_b = None

    enc_layers = []
    for _ in range(layer_n):
        enc_layers.append({
            "attn": _init_self_attn(nxt(4), d, head_n),
            "fc_w": _glorot(nxt()[0], (d, d)).astype(_MXU_DTYPE),
            "fc_b": jnp.zeros((1, d), jnp.float32),
            "ln1_g": jnp.ones((d,), jnp.float32), "ln1_b": jnp.zeros((d,), jnp.float32),
            "ln2_g": jnp.ones((d,), jnp.float32), "ln2_b": jnp.zeros((d,), jnp.float32),
        })

    dec_layers = []
    for _ in range(layer_n):
        dec_layers.append({
            "self_attn": _init_self_attn(nxt(4), d, head_n),
            "cross_attn": _init_cross_attn(nxt(4), d, head_n),
            "fc_w": _glorot(nxt()[0], (d, d)).astype(_MXU_DTYPE),
            "fc_b": jnp.zeros((1, d), jnp.float32),
            "ln1_g": jnp.ones((d,), jnp.float32), "ln1_b": jnp.zeros((d,), jnp.float32),
            "ln2_g": jnp.ones((d,), jnp.float32), "ln2_b": jnp.zeros((d,), jnp.float32),
            "ln3_g": jnp.ones((d,), jnp.float32), "ln3_b": jnp.zeros((d,), jnp.float32),
        })

    return {
        "enc_hidden_fc": enc_hidden_fc,
        "dec_hidden_fc": dec_hidden_fc,
        "encoder": {"layers": enc_layers},
        "decoder": {"layers": dec_layers, "out_w": dec_out_w, "out_b": dec_out_b},
    }


# ----------------------------------------------------------------------------
# Demo
# ----------------------------------------------------------------------------

if __name__ == "__main__":
    B = 2
    seq_len = 8
    depth_dim = 32
    hidden_dim = 64     # != depth_dim -> exercises encoder_hidden_fc / decoder_hidden_fc
    layer_n = 2
    head_n = 2
    pe_weight = 1.0

    root = jax.random.PRNGKey(0)
    k_params, k_enc, k_dec = jax.random.split(root, 3)

    params = init_params(k_params, depth_dim, hidden_dim, layer_n, head_n)

    encoded_observed = jax.random.normal(k_enc, (B, seq_len, depth_dim), jnp.float32)
    decoded_observed = jax.random.normal(k_dec, (B, seq_len, depth_dim), jnp.float32)

    fwd = jax.jit(partial(transformer_controller_forward,
                          seq_len=seq_len, head_n=head_n, pe_weight=pe_weight))

    out = fwd(params, encoded_observed, decoded_observed, None, None)
    out = jax.block_until_ready(out)

    assert out.shape == (B, seq_len, depth_dim), out.shape
    assert bool(jnp.all(jnp.isfinite(out)))
    print("KERNEL_OK")
</pallas_src>

<mosaic_0001>
module attributes {stable_mosaic.version = 11 : i64} {
  func.func @_linear_kernel(%arg0: i32, %arg1: i32, %arg2: i32, %arg3: memref<16x32xbf16, #tpu.memory_space<vmem>>, %arg4: memref<32x64xbf16, #tpu.memory_space<vmem>>, %arg5: memref<1x64xf32, #tpu.memory_space<vmem>>, %arg6: memref<16x64xbf16, #tpu.memory_space<vmem>>, %arg7: memref<16x64xf32, #tpu.memory_space<vmem>>) attributes {dimension_semantics = [#tpu.dimension_semantics<parallel>, #tpu.dimension_semantics<parallel>, #tpu.dimension_semantics<arbitrary>], iteration_bounds = array<i64: 1, 1, 1>, scalar_prefetch = 0 : i64, scratch_operands = 1 : i64, tpu.core_type = #tpu.core_type<tc>, window_params = [{transform_indices = @transform_0, window_bounds = array<i64: 16, 32>}, {transform_indices = @transform_1, window_bounds = array<i64: 32, 64>}, {transform_indices = @transform_2, window_bounds = array<i64: 1, 64>}, {transform_indices = @transform_3, window_bounds = array<i64: 16, 64>}]} {
    %c0_i32 = arith.constant 0 : i32
    %0 = arith.cmpi eq, %arg2, %c0_i32 : i32
    %1 = arith.extui %0 : i1 to i32
    %c0_i32_0 = arith.constant 0 : i32
    %2 = arith.cmpi ne, %1, %c0_i32_0 : i32
    scf.if %2 {
      %cst_10 = arith.constant 0.000000e+00 : f32
      %12 = vector.broadcast %cst_10 : f32 to vector<16x64xf32>
      %c0_11 = arith.constant 0 : index
      %c0_12 = arith.constant 0 : index
      %13 = vector.load %arg7[%c0_11, %c0_12] : memref<16x64xf32, #tpu.memory_space<vmem>>, vector<16x64xf32>
      tpu.vector_store %arg7[%c0_11, %c0_12], %12 {strides = array<i32>} : memref<16x64xf32, #tpu.memory_space<vmem>>, vector<16x64xf32>,
    } else {
    }
    %c0 = arith.constant 0 : index
    %c0_1 = arith.constant 0 : index
    %3 = vector.load %arg7[%c0, %c0_1] : memref<16x64xf32, #tpu.memory_space<vmem>>, vector<16x64xf32>
    %c0_2 = arith.constant 0 : index
    %c0_3 = arith.constant 0 : index
    %4 = vector.load %arg3[%c0_2, %c0_3] : memref<16x32xbf16, #tpu.memory_space<vmem>>, vector<16x32xbf16>
    %c0_4 = arith.constant 0 : index
    %c0_5 = arith.constant 0 : index
    %5 = vector.load %arg4[%c0_4, %c0_5] : memref<32x64xbf16, #tpu.memory_space<vmem>>, vector<32x64xbf16>
    %cst = arith.constant dense<0.000000e+00> : vector<16x64xf32>
    %6 = tpu.matmul %4, %5, %cst {dimension_numbers = #tpu.dot_dimension_numbers<[1], [0], [0], [1], [0, 0, 1, 1], [], []>} : vector<16x32xbf16>, vector<32x64xbf16>, vector<16x64xf32> -> vector<16x64xf32>
    %7 = arith.addf %3, %6 : vector<16x64xf32>
    %c0_6 = arith.constant 0 : index
    %c0_7 = arith.constant 0 : index
    %8 = vector.load %arg7[%c0_6, %c0_7] : memref<16x64xf32, #tpu.memory_space<vmem>>, vector<16x64xf32>
    tpu.vector_store %arg7[%c0_6, %c0_7], %7 {strides = array<i32>} : memref<16x64xf32, #tpu.memory_space<vmem>>, vector<16x64xf32>,
    %c0_i32_8 = arith.constant 0 : i32
    %9 = arith.cmpi eq, %arg2, %c0_i32_8 : i32
    %10 = arith.extui %9 : i1 to i32
    %c0_i32_9 = arith.constant 0 : i32
    %11 = arith.cmpi ne, %10, %c0_i32_9 : i32
    scf.if %11 {
      %c0_10 = arith.constant 0 : index
      %c0_11 = arith.constant 0 : index
      %12 = vector.load %arg7[%c0_10, %c0_11] : memref<16x64xf32, #tpu.memory_space<vmem>>, vector<16x64xf32>
      %c0_12 = arith.constant 0 : index
      %c0_13 = arith.constant 0 : index
      %13 = vector.load %arg5[%c0_12, %c0_13] : memref<1x64xf32, #tpu.memory_space<vmem>>, vector<1x64xf32>
      %14 = vector.broadcast %13 : vector<1x64xf32> to vector<16x64xf32>
      %15 = arith.addf %12, %14 : vector<16x64xf32>
      %16 = arith.truncf %15 : vector<16x64xf32> to vector<16x64xbf16>
      %c0_14 = arith.constant 0 : index
      %c0_15 = arith.constant 0 : index
      %17 = vector.load %arg6[%c0_14, %c0_15] : memref<16x64xbf16, #tpu.memory_space<vmem>>, vector<16x64xbf16>
      tpu.vector_store %arg6[%c0_14, %c0_15], %16 {strides = array<i32>} : memref<16x64xbf16, #tpu.memory_space<vmem>>, vector<16x64xbf16>,
    } else {
    }
    return
  }
  func.func @transform_0(%arg0: i32, %arg1: i32, %arg2: i32) -> (i32, i32) {
    %c0_i32 = arith.constant 0 : i32
    return %arg0, %arg2 : i32, i32
  }
  func.func @transform_1(%arg0: i32, %arg1: i32, %arg2: i32) -> (i32, i32) {
    %c0_i32 = arith.constant 0 : i32
    return %arg2, %arg1 : i32, i32
  }
  func.func @transform_2(%arg0: i32, %arg1: i32, %arg2: i32) -> (i32, i32) {
    %c0_i32 = arith.constant 0 : i32
    %c0_i32_0 = arith.constant 0 : i32
    return %c0_i32, %arg1 : i32, i32
  }
  func.func @transform_3(%arg0: i32, %arg1: i32, %arg2: i32) -> (i32, i32) {
    %c0_i32 = arith.constant 0 : i32
    return %arg0, %arg1 : i32, i32
  }
}

module attributes {stable_mosaic.version = 11 : i64} {
  func.func @_qkv_linear_kernel(%arg0: i32, %arg1: i32, %arg2: memref<16x64xbf16, #tpu.memory_space<vmem>>, %arg3: memref<64x192xbf16, #tpu.memory_space<vmem>>, %arg4: memref<1x192xf32, #tpu.memory_space<vmem>>, %arg5: memref<16x64xbf16, #tpu.memory_space<vmem>>, %arg6: memref<16x128xbf16, #tpu.memory_space<vmem>>, %arg7: memref<16x192xf32, #tpu.memory_space<vmem>>) attributes {dimension_semantics = [#tpu.dimension_semantics<parallel>, #tpu.dimension_semantics<arbitrary>], iteration_bounds = array<i64: 1, 1>, scalar_prefetch = 0 : i64, scratch_operands = 1 : i64, tpu.core_type = #tpu.core_type<tc>, window_params = [{transform_indices = @transform_0, window_bounds = array<i64: 16, 64>}, {transform_indices = @transform_1, window_bounds = array<i64: 64, 192>}, {pipeline_mode = #tpu.pipeline_mode<synchronous>, transform_indices = @transform_2, window_bounds = array<i64: 1, 192>}, {transform_indices = @transform_3, window_bounds = array<i64: 16, 64>}, {transform_indices = @transform_4, window_bounds = array<i64: 16, 128>}]} {
    %c0_i32 = arith.constant 0 : i32
    %0 = arith.cmpi eq, %arg1, %c0_i32 : i32
    %1 = arith.extui %0 : i1 to i32
    %c0_i32_0 = arith.constant 0 : i32
    %2 = arith.cmpi ne, %1, %c0_i32_0 : i32
    scf.if %2 {
      %cst_10 = arith.constant 0.000000e+00 : f32
      %12 = vector.broadcast %cst_10 : f32 to vector<16x192xf32>
      %c0_11 = arith.constant 0 : index
      %c0_12 = arith.constant 0 : index
      %13 = vector.load %arg7[%c0_11, %c0_12] : memref<16x192xf32, #tpu.memory_space<vmem>>, vector<16x192xf32>
      tpu.vector_store %arg7[%c0_11, %c0_12], %12 {strides = array<i32>} : memref<16x192xf32, #tpu.memory_space<vmem>>, vector<16x192xf32>,
    } else {
    }
    %c0 = arith.constant 0 : index
    %c0_1 = arith.constant 0 : index
    %3 = vector.load %arg7[%c0, %c0_1] : memref<16x192xf32, #tpu.memory_space<vmem>>, vector<16x192xf32>
    %c0_2 = arith.constant 0 : index
    %c0_3 = arith.constant 0 : index
    %4 = vector.load %arg2[%c0_2, %c0_3] : memref<16x64xbf16, #tpu.memory_space<vmem>>, vector<16x64xbf16>
    %c0_4 = arith.constant 0 : index
    %c0_5 = arith.constant 0 : index
    %5 = vector.load %arg3[%c0_4, %c0_5] : memref<64x192xbf16, #tpu.memory_space<vmem>>, vector<64x192xbf16>
    %cst = arith.constant dense<0.000000e+00> : vector<16x192xf32>
    %6 = tpu.matmul %4, %5, %cst {dimension_numbers = #tpu.dot_dimension_numbers<[1], [0], [0], [1], [0, 0, 1, 1], [], []>} : vector<16x64xbf16>, vector<64x192xbf16>, vector<16x192xf32> -> vector<16x192xf32>
    %7 = arith.addf %3, %6 : vector<16x192xf32>
    %c0_6 = arith.constant 0 : index
    %c0_7 = arith.constant 0 : index
    %8 = vector.load %arg7[%c0_6, %c0_7] : memref<16x192xf32, #tpu.memory_space<vmem>>, vector<16x192xf32>
    tpu.vector_store %arg7[%c0_6, %c0_7], %7 {strides = array<i32>} : memref<16x192xf32, #tpu.memory_space<vmem>>, vector<16x192xf32>,
    %c0_i32_8 = arith.constant 0 : i32
    %9 = arith.cmpi eq, %arg1, %c0_i32_8 : i32
    %10 = arith.extui %9 : i1 to i32
    %c0_i32_9 = arith.constant 0 : i32
    %11 = arith.cmpi ne, %10, %c0_i32_9 : i32
    scf.if %11 {
      %c0_10 = arith.constant 0 : index
      %c0_11 = arith.constant 0 : index
      %12 = vector.load %arg7[%c0_10, %c0_11] : memref<16x192xf32, #tpu.memory_space<vmem>>, vector<16x192xf32>
      %c0_12 = arith.constant 0 : index
      %c0_13 = arith.constant 0 : index
      %13 = vector.load %arg4[%c0_12, %c0_13] : memref<1x192xf32, #tpu.memory_space<vmem>>, vector<1x192xf32>
      %14 = vector.broadcast %13 : vector<1x192xf32> to vector<16x192xf32>
      %15 = arith.addf %12, %14 : vector<16x192xf32>
      %16 = vector.extract_strided_slice %15 {offsets = [0, 0], sizes = [16, 64], strides = [1, 1]} : vector<16x192xf32> to vector<16x64xf32>
      %17 = arith.truncf %16 : vector<16x64xf32> to vector<16x64xbf16>
      %c0_14 = arith.constant 0 : index
      %c0_15 = arith.constant 0 : index
      %18 = vector.load %arg5[%c0_14, %c0_15] : memref<16x64xbf16, #tpu.memory_space<vmem>>, vector<16x64xbf16>
      tpu.vector_store %arg5[%c0_14, %c0_15], %17 {strides = array<i32>} : memref<16x64xbf16, #tpu.memory_space<vmem>>, vector<16x64xbf16>,
      %19 = vector.extract_strided_slice %15 {offsets = [0, 64], sizes = [16, 128], strides = [1, 1]} : vector<16x192xf32> to vector<16x128xf32>
      %20 = arith.truncf %19 : vector<16x128xf32> to vector<16x128xbf16>
      %c0_16 = arith.constant 0 : index
      %c0_17 = arith.constant 0 : index
      %21 = vector.load %arg6[%c0_16, %c0_17] : memref<16x128xbf16, #tpu.memory_space<vmem>>, vector<16x128xbf16>
      tpu.vector_store %arg6[%c0_16, %c0_17], %20 {strides = array<i32>} : memref<16x128xbf16, #tpu.memory_space<vmem>>, vector<16x128xbf16>,
    } else {
    }
    return
  }
  func.func @transform_0(%arg0: i32, %arg1: i32) -> (i32, i32) {
    %c0_i32 = arith.constant 0 : i32
    return %arg0, %arg1 : i32, i32
  }
  func.func @transform_1(%arg0: i32, %arg1: i32) -> (i32, i32) {
    %c0_i32 = arith.constant 0 : i32
    %c0_i32_0 = arith.constant 0 : i32
    return %arg1, %c0_i32 : i32, i32
  }
  func.func @transform_2(%arg0: i32, %arg1: i32) -> (i32, i32) {
    %c0_i32 = arith.constant 0 : i32
    %c0_i32_0 = arith.constant 0 : i32
    %c0_i32_1 = arith.constant 0 : i32
    return %c0_i32, %c0_i32_0 : i32, i32
  }
  func.func @transform_3(%arg0: i32, %arg1: i32) -> (i32, i32) {
    %c0_i32 = arith.constant 0 : i32
    %c0_i32_0 = arith.constant 0 : i32
    return %arg0, %c0_i32 : i32, i32
  }
  func.func @transform_4(%arg0: i32, %arg1: i32) -> (i32, i32) {
    %c0_i32 = arith.constant 0 : i32
    %c0_i32_0 = arith.constant 0 : i32
    return %arg0, %c0_i32 : i32, i32
  }
}

module attributes {stable_mosaic.version = 11 : i64} {
  func.func @_mha_kernel(%arg0: i32, %arg1: i32, %arg2: i32, %arg3: memref<1x8x64xbf16, #tpu.memory_space<vmem>>, %arg4: memref<1x8x128xbf16, #tpu.memory_space<vmem>>, %arg5: memref<1x8x64xbf16, #tpu.memory_space<vmem>>, %arg6: memref<2x8x1xf32, #tpu.memory_space<vmem>>, %arg7: memref<2x8x1xf32, #tpu.memory_space<vmem>>, %arg8: memref<8x64xf32, #tpu.memory_space<vmem>>) attributes {dimension_semantics = [#tpu.dimension_semantics<parallel>, #tpu.dimension_semantics<parallel>, #tpu.dimension_semantics<arbitrary>], iteration_bounds = array<i64: 2, 1, 1>, scalar_prefetch = 0 : i64, scratch_operands = 3 : i64, tpu.core_type = #tpu.core_type<tc>, window_params = [{transform_indices = @transform_0, window_bounds = array<i64: 1, 8, 64>}, {transform_indices = @transform_1, window_bounds = array<i64: 1, 8, 128>}, {transform_indices = @transform_2, window_bounds = array<i64: 1, 8, 64>}]} {
    %c0_i32 = arith.constant 0 : i32
    %0 = arith.cmpi eq, %arg2, %c0_i32 : i32
    %1 = arith.extui %0 : i1 to i32
    %c0_i32_0 = arith.constant 0 : i32
    %2 = arith.cmpi ne, %1, %c0_i32_0 : i32
    scf.if %2 {
      %cst_45 = arith.constant -1.000000e+30 : f32
      %78 = vector.broadcast %cst_45 : f32 to vector<2x8x1xf32>
      %c0_46 = arith.constant 0 : index
      %c0_47 = arith.constant 0 : index
      %c0_48 = arith.constant 0 : index
      %79 = vector.load %arg6[%c0_46, %c0_47, %c0_48] : memref<2x8x1xf32, #tpu.memory_space<vmem>>, vector<2x8x1xf32>
      tpu.vector_store %arg6[%c0_46, %c0_47, %c0_48], %78 {strides = array<i32>} : memref<2x8x1xf32, #tpu.memory_space<vmem>>, vector<2x8x1xf32>,
      %cst_49 = arith.constant 0.000000e+00 : f32
      %80 = vector.broadcast %cst_49 : f32 to vector<2x8x1xf32>
      %c0_50 = arith.constant 0 : index
      %c0_51 = arith.constant 0 : index
      %c0_52 = arith.constant 0 : index
      %81 = vector.load %arg7[%c0_50, %c0_51, %c0_52] : memref<2x8x1xf32, #tpu.memory_space<vmem>>, vector<2x8x1xf32>
      tpu.vector_store %arg7[%c0_50, %c0_51, %c0_52], %80 {strides = array<i32>} : memref<2x8x1xf32, #tpu.memory_space<vmem>>, vector<2x8x1xf32>,
      %cst_53 = arith.constant 0.000000e+00 : f32
      %82 = vector.broadcast %cst_53 : f32 to vector<8x64xf32>
      %c0_54 = arith.constant 0 : index
      %c0_55 = arith.constant 0 : index
      %83 = vector.load %arg8[%c0_54, %c0_55] : memref<8x64xf32, #tpu.memory_space<vmem>>, vector<8x64xf32>
      tpu.vector_store %arg8[%c0_54, %c0_55], %82 {strides = array<i32>} : memref<8x64xf32, #tpu.memory_space<vmem>>, vector<8x64xf32>,
    } else {
    }
    %c0 = arith.constant 0 : index
    %c0_1 = arith.constant 0 : index
    %c0_2 = arith.constant 0 : index
    %3 = vector.load %arg3[%c0, %c0_1, %c0_2] : memref<1x8x64xbf16, #tpu.memory_space<vmem>>, vector<1x8x64xbf16>
    %4 = vector.shape_cast %3 : vector<1x8x64xbf16> to vector<8x64xbf16>
    %c0_3 = arith.constant 0 : index
    %c0_4 = arith.constant 0 : index
    %c0_5 = arith.constant 0 : index
    %5 = vector.load %arg4[%c0_3, %c0_4, %c0_5] : memref<1x8x128xbf16, #tpu.memory_space<vmem>>, vector<1x8x128xbf16>
    %6 = vector.shape_cast %5 : vector<1x8x128xbf16> to vector<8x128xbf16>
    %7 = vector.extract_strided_slice %6 {offsets = [0, 0], sizes = [8, 64], strides = [1, 1]} : vector<8x128xbf16> to vector<8x64xbf16>
    %8 = vector.extract_strided_slice %6 {offsets = [0, 64], sizes = [8, 64], strides = [1, 1]} : vector<8x128xbf16> to vector<8x64xbf16>
    %9 = vector.extract_strided_slice %4 {offsets = [0, 0], sizes = [8, 32], strides = [1, 1]} : vector<8x64xbf16> to vector<8x32xbf16>
    %10 = vector.extract_strided_slice %7 {offsets = [0, 0], sizes = [8, 32], strides = [1, 1]} : vector<8x64xbf16> to vector<8x32xbf16>
    %cst = arith.constant dense<0.000000e+00> : vector<8x8xf32>
    %11 = tpu.matmul %9, %10, %cst {dimension_numbers = #tpu.dot_dimension_numbers<[1], [1], [0], [0], [0, 0, 1, 0], [], []>} : vector<8x32xbf16>, vector<8x32xbf16>, vector<8x8xf32> -> vector<8x8xf32>
    %c0_6 = arith.constant 0 : index
    %c0_7 = arith.constant 0 : index
    %c0_8 = arith.constant 0 : index
    %12 = vector.load %arg6[%c0_6, %c0_7, %c0_8] : memref<2x8x1xf32, #tpu.memory_space<vmem>>, vector<1x8x1xf32>
    %13 = vector.shape_cast %12 : vector<1x8x1xf32> to vector<8x1xf32>
    %cst_9 = arith.constant dense<0xFF800000> : vector<8xf32>
    %14 = vector.multi_reduction <maximumf>, %11, %cst_9 [1] : vector<8x8xf32> to vector<8xf32>
    %15 = vector.shape_cast %14 : vector<8xf32> to vector<8x1xf32>
    %16 = arith.maximumf %13, %15 : vector<8x1xf32>
    %17 = arith.subf %13, %16 : vector<8x1xf32>
    %18 = math.exp %17 : vector<8x1xf32>
    %19 = vector.broadcast %16 : vector<8x1xf32> to vector<8x8xf32>
    %20 = arith.subf %11, %19 : vector<8x8xf32>
    %21 = math.exp %20 : vector<8x8xf32>
    %c0_10 = arith.constant 0 : index
    %c0_11 = arith.constant 0 : index
    %c0_12 = arith.constant 0 : index
    %22 = vector.load %arg7[%c0_10, %c0_11, %c0_12] : memref<2x8x1xf32, #tpu.memory_space<vmem>>, vector<1x8x1xf32>
    %23 = vector.shape_cast %22 : vector<1x8x1xf32> to vector<8x1xf32>
    %24 = arith.mulf %18, %23 : vector<8x1xf32>
    %cst_13 = arith.constant dense<0.000000e+00> : vector<8xf32>
    %25 = vector.multi_reduction <add>, %21, %cst_13 [1] : vector<8x8xf32> to vector<8xf32>
    %26 = vector.shape_cast %25 : vector<8xf32> to vector<8x1xf32>
    %27 = arith.addf %24, %26 : vector<8x1xf32>
    %c0_14 = arith.constant 0 : index
    %c0_15 = arith.constant 0 : index
    %c0_16 = arith.constant 0 : index
    %28 = vector.load %arg7[%c0_14, %c0_15, %c0_16] : memref<2x8x1xf32, #tpu.memory_space<vmem>>, vector<1x8x1xf32>
    %29 = vector.shape_cast %28 : vector<1x8x1xf32> to vector<8x1xf32>
    %30 = vector.shape_cast %27 : vector<8x1xf32> to vector<1x8x1xf32>
    tpu.vector_store %arg7[%c0_14, %c0_15, %c0_16], %30 {strides = array<i32>} : memref<2x8x1xf32, #tpu.memory_space<vmem>>, vector<1x8x1xf32>,
    %c0_17 = arith.constant 0 : index
    %c0_18 = arith.constant 0 : index
    %31 = vector.load %arg8[%c0_17, %c0_18] : memref<8x64xf32, #tpu.memory_space<vmem>>, vector<8x32xf32>
    %32 = vector.broadcast %18 : vector<8x1xf32> to vector<8x32xf32>
    %33 = arith.mulf %32, %31 : vector<8x32xf32>
    %34 = arith.truncf %21 : vector<8x8xf32> to vector<8x8xbf16>
    %35 = vector.extract_strided_slice %8 {offsets = [0, 0], sizes = [8, 32], strides = [1, 1]} : vector<8x64xbf16> to vector<8x32xbf16>
    %cst_19 = arith.constant dense<0.000000e+00> : vector<8x32xf32>
    %36 = tpu.matmul %34, %35, %cst_19 {dimension_numbers = #tpu.dot_dimension_numbers<[1], [0], [0], [1], [0, 0, 1, 1], [], []>} : vector<8x8xbf16>, vector<8x32xbf16>, vector<8x32xf32> -> vector<8x32xf32>
    %37 = arith.addf %33, %36 : vector<8x32xf32>
    %c0_20 = arith.constant 0 : index
    %c0_21 = arith.constant 0 : index
    %38 = vector.load %arg8[%c0_20, %c0_21] : memref<8x64xf32, #tpu.memory_space<vmem>>, vector<8x32xf32>
    tpu.vector_store %arg8[%c0_20, %c0_21], %37 {strides = array<i32>} : memref<8x64xf32, #tpu.memory_space<vmem>>, vector<8x32xf32>,
    %c0_22 = arith.constant 0 : index
    %c0_23 = arith.constant 0 : index
    %c0_24 = arith.constant 0 : index
    %39 = vector.load %arg6[%c0_22, %c0_23, %c0_24] : memref<2x8x1xf32, #tpu.memory_space<vmem>>, vector<1x8x1xf32>
    %40 = vector.shape_cast %39 : vector<1x8x1xf32> to vector<8x1xf32>
    %41 = vector.shape_cast %16 : vector<8x1xf32> to vector<1x8x1xf32>
    tpu.vector_store %arg6[%c0_22, %c0_23, %c0_24], %41 {strides = array<i32>} : memref<2x8x1xf32, #tpu.memory_space<vmem>>, vector<1x8x1xf32>,
    %42 = vector.extract_strided_slice %4 {offsets = [0, 32], sizes = [8, 32], strides = [1, 1]} : vector<8x64xbf16> to vector<8x32xbf16>
    %43 = vector.extract_strided_slice %7 {offsets = [0, 32], sizes = [8, 32], strides = [1, 1]} : vector<8x64xbf16> to vector<8x32xbf16>
    %cst_25 = arith.constant dense<0.000000e+00> : vector<8x8xf32>
    %44 = tpu.matmul %42, %43, %cst_25 {dimension_numbers = #tpu.dot_dimension_numbers<[1], [1], [0], [0], [0, 0, 1, 0], [], []>} : vector<8x32xbf16>, vector<8x32xbf16>, vector<8x8xf32> -> vector<8x8xf32>
    %c1 = arith.constant 1 : index
    %c0_26 = arith.constant 0 : index
    %c0_27 = arith.constant 0 : index
    %45 = vector.load %arg6[%c1, %c0_26, %c0_27] : memref<2x8x1xf32, #tpu.memory_space<vmem>>, vector<1x8x1xf32>
    %46 = vector.shape_cast %45 : vector<1x8x1xf32> to vector<8x1xf32>
    %cst_28 = arith.constant dense<0xFF800000> : vector<8xf32>
    %47 = vector.multi_reduction <maximumf>, %44, %cst_28 [1] : vector<8x8xf32> to vector<8xf32>
    %48 = vector.shape_cast %47 : vector<8xf32> to vector<8x1xf32>
    %49 = arith.maximumf %46, %48 : vector<8x1xf32>
    %50 = arith.subf %46, %49 : vector<8x1xf32>
    %51 = math.exp %50 : vector<8x1xf32>
    %52 = vector.broadcast %49 : vector<8x1xf32> to vector<8x8xf32>
    %53 = arith.subf %44, %52 : vector<8x8xf32>
    %54 = math.exp %53 : vector<8x8xf32>
    %c1_29 = arith.constant 1 : index
    %c0_30 = arith.constant 0 : index
    %c0_31 = arith.constant 0 : index
    %55 = vector.load %arg7[%c1_29, %c0_30, %c0_31] : memref<2x8x1xf32, #tpu.memory_space<vmem>>, vector<1x8x1xf32>
    %56 = vector.shape_cast %55 : vector<1x8x1xf32> to vector<8x1xf32>
    %57 = arith.mulf %51, %56 : vector<8x1xf32>
    %cst_32 = arith.constant dense<0.000000e+00> : vector<8xf32>
    %58 = vector.multi_reduction <add>, %54, %cst_32 [1] : vector<8x8xf32> to vector<8xf32>
    %59 = vector.shape_cast %58 : vector<8xf32> to vector<8x1xf32>
    %60 = arith.addf %57, %59 : vector<8x1xf32>
    %c1_33 = arith.constant 1 : index
    %c0_34 = arith.constant 0 : index
    %c0_35 = arith.constant 0 : index
    %61 = vector.load %arg7[%c1_33, %c0_34, %c0_35] : memref<2x8x1xf32, #tpu.memory_space<vmem>>, vector<1x8x1xf32>
    %62 = vector.shape_cast %61 : vector<1x8x1xf32> to vector<8x1xf32>
    %63 = vector.shape_cast %60 : vector<8x1xf32> to vector<1x8x1xf32>
    tpu.vector_store %arg7[%c1_33, %c0_34, %c0_35], %63 {strides = array<i32>} : memref<2x8x1xf32, #tpu.memory_space<vmem>>, vector<1x8x1xf32>,
    %c0_36 = arith.constant 0 : index
    %c32 = arith.constant 32 : index
    %64 = vector.load %arg8[%c0_36, %c32] : memref<8x64xf32, #tpu.memory_space<vmem>>, vector<8x32xf32>
    %65 = vector.broadcast %51 : vector<8x1xf32> to vector<8x32xf32>
    %66 = arith.mulf %65, %64 : vector<8x32xf32>
    %67 = arith.truncf %54 : vector<8x8xf32> to vector<8x8xbf16>
    %68 = vector.extract_strided_slice %8 {offsets = [0, 32], sizes = [8, 32], strides = [1, 1]} : vector<8x64xbf16> to vector<8x32xbf16>
    %cst_37 = arith.constant dense<0.000000e+00> : vector<8x32xf32>
    %69 = tpu.matmul %67, %68, %cst_37 {dimension_numbers = #tpu.dot_dimension_numbers<[1], [0], [0], [1], [0, 0, 1, 1], [], []>} : vector<8x8xbf16>, vector<8x32xbf16>, vector<8x32xf32> -> vector<8x32xf32>
    %70 = arith.addf %66, %69 : vector<8x32xf32>
    %c0_38 = arith.constant 0 : index
    %c32_39 = arith.constant 32 : index
    %71 = vector.load %arg8[%c0_38, %c32_39] : memref<8x64xf32, #tpu.memory_space<vmem>>, vector<8x32xf32>
    tpu.vector_store %arg8[%c0_38, %c32_39], %70 {strides = array<i32>} : memref<8x64xf32, #tpu.memory_space<vmem>>, vector<8x32xf32>,
    %c1_40 = arith.constant 1 : index
    %c0_41 = arith.constant 0 : index
    %c0_42 = arith.constant 0 : index
    %72 = vector.load %arg6[%c1_40, %c0_41, %c0_42] : memref<2x8x1xf32, #tpu.memory_space<vmem>>, vector<1x8x1xf32>
    %73 = vector.shape_cast %72 : vector<1x8x1xf32> to vector<8x1xf32>
    %74 = vector.shape_cast %49 : vector<8x1xf32> to vector<1x8x1xf32>
    tpu.vector_store %arg6[%c1_40, %c0_41, %c0_42], %74 {strides = array<i32>} : memref<2x8x1xf32, #tpu.memory_space<vmem>>, vector<1x8x1xf32>,
    %c0_i32_43 = arith.constant 0 : i32
    %75 = arith.cmpi eq, %arg2, %c0_i32_43 : i32
    %76 = arith.extui %75 : i1 to i32
    %c0_i32_44 = arith.constant 0 : i32
    %77 = arith.cmpi ne, %76, %c0_i32_44 : i32
    scf.if %77 {
      %c0_45 = arith.constant 0 : index
      %c0_46 = arith.constant 0 : index
      %78 = vector.load %arg8[%c0_45, %c0_46] : memref<8x64xf32, #tpu.memory_space<vmem>>, vector<8x32xf32>
      %c0_47 = arith.constant 0 : index
      %c0_48 = arith.constant 0 : index
      %c0_49 = arith.constant 0 : index
      %79 = vector.load %arg7[%c0_47, %c0_48, %c0_49] : memref<2x8x1xf32, #tpu.memory_space<vmem>>, vector<1x8x1xf32>
      %80 = vector.shape_cast %79 : vector<1x8x1xf32> to vector<8x1xf32>
      %81 = tpu.reciprocal %80 {approx = true} : vector<8x1xf32> -> vector<8x1xf32>
      %82 = vector.broadcast %81 : vector<8x1xf32> to vector<8x32xf32>
      %83 = arith.mulf %78, %82 : vector<8x32xf32>
      %c0_50 = arith.constant 0 : index
      %c0_51 = arith.constant 0 : index
      %84 = vector.load %arg8[%c0_50, %c0_51] : memref<8x64xf32, #tpu.memory_space<vmem>>, vector<8x32xf32>
      tpu.vector_store %arg8[%c0_50, %c0_51], %83 {strides = array<i32>} : memref<8x64xf32, #tpu.memory_space<vmem>>, vector<8x32xf32>,
      %c0_52 = arith.constant 0 : index
      %c32_53 = arith.constant 32 : index
      %85 = vector.load %arg8[%c0_52, %c32_53] : memref<8x64xf32, #tpu.memory_space<vmem>>, vector<8x32xf32>
      %c1_54 = arith.constant 1 : index
      %c0_55 = arith.constant 0 : index
      %c0_56 = arith.constant 0 : index
      %86 = vector.load %arg7[%c1_54, %c0_55, %c0_56] : memref<2x8x1xf32, #tpu.memory_space<vmem>>, vector<1x8x1xf32>
      %87 = vector.shape_cast %86 : vector<1x8x1xf32> to vector<8x1xf32>
      %88 = tpu.reciprocal %87 {approx = true} : vector<8x1xf32> -> vector<8x1xf32>
      %89 = vector.broadcast %88 : vector<8x1xf32> to vector<8x32xf32>
      %90 = arith.mulf %85, %89 : vector<8x32xf32>
      %c0_57 = arith.constant 0 : index
      %c32_58 = arith.constant 32 : index
      %91 = vector.load %arg8[%c0_57, %c32_58] : memref<8x64xf32, #tpu.memory_space<vmem>>, vector<8x32xf32>
      tpu.vector_store %arg8[%c0_57, %c32_58], %90 {strides = array<i32>} : memref<8x64xf32, #tpu.memory_space<vmem>>, vector<8x32xf32>,
      %c0_59 = arith.constant 0 : index
      %c0_60 = arith.constant 0 : index
      %92 = vector.load %arg8[%c0_59, %c0_60] : memref<8x64xf32, #tpu.memory_space<vmem>>, vector<8x64xf32>
      %93 = arith.truncf %92 : vector<8x64xf32> to vector<8x64xbf16>
      %c0_61 = arith.constant 0 : index
      %c0_62 = arith.constant 0 : index
      %c0_63 = arith.constant 0 : index
      %94 = vector.load %arg5[%c0_61, %c0_62, %c0_63] : memref<1x8x64xbf16, #tpu.memory_space<vmem>>, vector<1x8x64xbf16>
      %95 = vector.shape_cast %94 : vector<1x8x64xbf16> to vector<8x64xbf16>
      %96 = vector.shape_cast %93 : vector<8x64xbf16> to vector<1x8x64xbf16>
      tpu.vector_store %arg5[%c0_61, %c0_62, %c0_63], %96 {strides = array<i32>} : memref<1x8x64xbf16, #tpu.memory_space<vmem>>, vector<1x8x64xbf16>,
    } else {
    }
    return
  }
  func.func @transform_0(%arg0: i32, %arg1: i32, %arg2: i32) -> (i32, i32, i32) {
    %c0_i32 = arith.constant 0 : i32
    %c0_i32_0 = arith.constant 0 : i32
    return %arg0, %arg1, %c0_i32 : i32, i32, i32
  }
  func.func @transform_1(%arg0: i32, %arg1: i32, %arg2: i32) -> (i32, i32, i32) {
    %c0_i32 = arith.constant 0 : i32
    %c0_i32_0 = arith.constant 0 : i32
    return %arg0, %arg2, %c0_i32 : i32, i32, i32
  }
  func.func @transform_2(%arg0: i32, %arg1: i32, %arg2: i32) -> (i32, i32, i32) {
    %c0_i32 = arith.constant 0 : i32
    %c0_i32_0 = arith.constant 0 : i32
    return %arg0, %arg1, %c0_i32 : i32, i32, i32
  }
}

module attributes {stable_mosaic.version = 11 : i64} {
  func.func @_linear_res_ln_kernel(%arg0: i32, %arg1: i32, %arg2: memref<16x64xbf16, #tpu.memory_space<vmem>>, %arg3: memref<64x64xbf16, #tpu.memory_space<vmem>>, %arg4: memref<1x64xf32, #tpu.memory_space<vmem>>, %arg5: memref<16x64xbf16, #tpu.memory_space<vmem>>, %arg6: memref<1x64xf32, #tpu.memory_space<vmem>>, %arg7: memref<1x64xf32, #tpu.memory_space<vmem>>, %arg8: memref<16x64xbf16, #tpu.memory_space<vmem>>, %arg9: memref<16x64xf32, #tpu.memory_space<vmem>>) attributes {dimension_semantics = [#tpu.dimension_semantics<parallel>, #tpu.dimension_semantics<arbitrary>], iteration_bounds = array<i64: 1, 1>, scalar_prefetch = 0 : i64, scratch_operands = 1 : i64, tpu.core_type = #tpu.core_type<tc>, window_params = [{transform_indices = @transform_0, window_bounds = array<i64: 16, 64>}, {transform_indices = @transform_1, window_bounds = array<i64: 64, 64>}, {pipeline_mode = #tpu.pipeline_mode<synchronous>, transform_indices = @transform_2, window_bounds = array<i64: 1, 64>}, {transform_indices = @transform_3, window_bounds = array<i64: 16, 64>}, {pipeline_mode = #tpu.pipeline_mode<synchronous>, transform_indices = @transform_4, window_bounds = array<i64: 1, 64>}, {pipeline_mode = #tpu.pipeline_mode<synchronous>, transform_indices = @transform_5, window_bounds = array<i64: 1, 64>}, {transform_indices = @transform_6, window_bounds = array<i64: 16, 64>}]} {
    %c0_i32 = arith.constant 0 : i32
    %0 = arith.cmpi eq, %arg1, %c0_i32 : i32
    %1 = arith.extui %0 : i1 to i32
    %c0_i32_0 = arith.constant 0 : i32
    %2 = arith.cmpi ne, %1, %c0_i32_0 : i32
    scf.if %2 {
      %cst_10 = arith.constant 0.000000e+00 : f32
      %12 = vector.broadcast %cst_10 : f32 to vector<16x64xf32>
      %c0_11 = arith.constant 0 : index
      %c0_12 = arith.constant 0 : index
      %13 = vector.load %arg9[%c0_11, %c0_12] : memref<16x64xf32, #tpu.memory_space<vmem>>, vector<16x64xf32>
      tpu.vector_store %arg9[%c0_11, %c0_12], %12 {strides = array<i32>} : memref<16x64xf32, #tpu.memory_space<vmem>>, vector<16x64xf32>,
    } else {
    }
    %c0 = arith.constant 0 : index
    %c0_1 = arith.constant 0 : index
    %3 = vector.load %arg9[%c0, %c0_1] : memref<16x64xf32, #tpu.memory_space<vmem>>, vector<16x64xf32>
    %c0_2 = arith.constant 0 : index
    %c0_3 = arith.constant 0 : index
    %4 = vector.load %arg2[%c0_2, %c0_3] : memref<16x64xbf16, #tpu.memory_space<vmem>>, vector<16x64xbf16>
    %c0_4 = arith.constant 0 : index
    %c0_5 = arith.constant 0 : index
    %5 = vector.load %arg3[%c0_4, %c0_5] : memref<64x64xbf16, #tpu.memory_space<vmem>>, vector<64x64xbf16>
    %cst = arith.constant dense<0.000000e+00> : vector<16x64xf32>
    %6 = tpu.matmul %4, %5, %cst {dimension_numbers = #tpu.dot_dimension_numbers<[1], [0], [0], [1], [0, 0, 1, 1], [], []>} : vector<16x64xbf16>, vector<64x64xbf16>, vector<16x64xf32> -> vector<16x64xf32>
    %7 = arith.addf %3, %6 : vector<16x64xf32>
    %c0_6 = arith.constant 0 : index
    %c0_7 = arith.constant 0 : index
    %8 = vector.load %arg9[%c0_6, %c0_7] : memref<16x64xf32, #tpu.memory_space<vmem>>, vector<16x64xf32>
    tpu.vector_store %arg9[%c0_6, %c0_7], %7 {strides = array<i32>} : memref<16x64xf32, #tpu.memory_space<vmem>>, vector<16x64xf32>,
    %c0_i32_8 = arith.constant 0 : i32
    %9 = arith.cmpi eq, %arg1, %c0_i32_8 : i32
    %10 = arith.extui %9 : i1 to i32
    %c0_i32_9 = arith.constant 0 : i32
    %11 = arith.cmpi ne, %10, %c0_i32_9 : i32
    scf.if %11 {
      %c0_10 = arith.constant 0 : index
      %c0_11 = arith.constant 0 : index
      %12 = vector.load %arg9[%c0_10, %c0_11] : memref<16x64xf32, #tpu.memory_space<vmem>>, vector<16x64xf32>
      %c0_12 = arith.constant 0 : index
      %c0_13 = arith.constant 0 : index
      %13 = vector.load %arg4[%c0_12, %c0_13] : memref<1x64xf32, #tpu.memory_space<vmem>>, vector<1x64xf32>
      %14 = vector.broadcast %13 : vector<1x64xf32> to vector<16x64xf32>
      %15 = arith.addf %12, %14 : vector<16x64xf32>
      %c0_14 = arith.constant 0 : index
      %c0_15 = arith.constant 0 : index
      %16 = vector.load %arg5[%c0_14, %c0_15] : memref<16x64xbf16, #tpu.memory_space<vmem>>, vector<16x64xbf16>
      %17 = arith.extf %16 : vector<16x64xbf16> to vector<16x64xf32>
      %18 = arith.addf %15, %17 : vector<16x64xf32>
      %cst_16 = arith.constant dense<0.000000e+00> : vector<16xf32>
      %19 = vector.multi_reduction <add>, %18, %cst_16 [1] : vector<16x64xf32> to vector<16xf32>
      %20 = vector.shape_cast %19 : vector<16xf32> to vector<16x1xf32>
      %cst_17 = arith.constant 6.400000e+01 : f32
      %21 = vector.broadcast %cst_17 : f32 to vector<16x1xf32>
      %22 = arith.divf %20, %21 : vector<16x1xf32>
      %23 = vector.broadcast %22 : vector<16x1xf32> to vector<16x64xf32>
      %24 = arith.subf %18, %23 : vector<16x64xf32>
      %25 = arith.mulf %24, %24 : vector<16x64xf32>
      %cst_18 = arith.constant dense<0.000000e+00> : vector<16xf32>
      %26 = vector.multi_reduction <add>, %25, %cst_18 [1] : vector<16x64xf32> to vector<16xf32>
      %27 = vector.shape_cast %26 : vector<16xf32> to vector<16x1xf32>
      %cst_19 = arith.constant 6.400000e+01 : f32
      %28 = vector.broadcast %cst_19 : f32 to vector<16x1xf32>
      %29 = arith.divf %27, %28 : vector<16x1xf32>
      %30 = vector.broadcast %22 : vector<16x1xf32> to vector<16x64xf32>
      %31 = arith.subf %18, %30 : vector<16x64xf32>
      %cst_20 = arith.constant 9.99999974E-6 : f32
      %32 = vector.broadcast %cst_20 : f32 to vector<16x1xf32>
      %33 = arith.addf %29, %32 : vector<16x1xf32>
      %34 = math.rsqrt %33 : vector<16x1xf32>
      %35 = vector.broadcast %34 : vector<16x1xf32> to vector<16x64xf32>
      %36 = arith.mulf %31, %35 : vector<16x64xf32>
      %c0_21 = arith.constant 0 : index
      %c0_22 = arith.constant 0 : index
      %37 = vector.load %arg6[%c0_21, %c0_22] : memref<1x64xf32, #tpu.memory_space<vmem>>, vector<1x64xf32>
      %38 = vector.broadcast %37 : vector<1x64xf32> to vector<16x64xf32>
      %39 = arith.mulf %36, %38 : vector<16x64xf32>
      %c0_23 = arith.constant 0 : index
      %c0_24 = arith.constant 0 : index
      %40 = vector.load %arg7[%c0_23, %c0_24] : memref<1x64xf32, #tpu.memory_space<vmem>>, vector<1x64xf32>
      %41 = vector.broadcast %40 : vector<1x64xf32> to vector<16x64xf32>
      %42 = arith.addf %39, %41 : vector<16x64xf32>
      %43 = arith.truncf %42 : vector<16x64xf32> to vector<16x64xbf16>
      %c0_25 = arith.constant 0 : index
      %c0_26 = arith.constant 0 : index
      %44 = vector.load %arg8[%c0_25, %c0_26] : memref<16x64xbf16, #tpu.memory_space<vmem>>, vector<16x64xbf16>
      tpu.vector_store %arg8[%c0_25, %c0_26], %43 {strides = array<i32>} : memref<16x64xbf16, #tpu.memory_space<vmem>>, vector<16x64xbf16>,
    } else {
    }
    return
  }
  func.func @transform_0(%arg0: i32, %arg1: i32) -> (i32, i32) {
    %c0_i32 = arith.constant 0 : i32
    return %arg0, %arg1 : i32, i32
  }
  func.func @transform_1(%arg0: i32, %arg1: i32) -> (i32, i32) {
    %c0_i32 = arith.constant 0 : i32
    %c0_i32_0 = arith.constant 0 : i32
    return %arg1, %c0_i32 : i32, i32
  }
  func.func @transform_2(%arg0: i32, %arg1: i32) -> (i32, i32) {
    %c0_i32 = arith.constant 0 : i32
    %c0_i32_0 = arith.constant 0 : i32
    %c0_i32_1 = arith.constant 0 : i32
    return %c0_i32, %c0_i32_0 : i32, i32
  }
  func.func @transform_3(%arg0: i32, %arg1: i32) -> (i32, i32) {
    %c0_i32 = arith.constant 0 : i32
    %c0_i32_0 = arith.constant 0 : i32
    return %arg0, %c0_i32 : i32, i32
  }
  func.func @transform_4(%arg0: i32, %arg1: i32) -> (i32, i32) {
    %c0_i32 = arith.constant 0 : i32
    %c0_i32_0 = arith.constant 0 : i32
    %c0_i32_1 = arith.constant 0 : i32
    return %c0_i32, %c0_i32_0 : i32, i32
  }
  func.func @transform_5(%arg0: i32, %arg1: i32) -> (i32, i32) {
    %c0_i32 = arith.constant 0 : i32
    %c0_i32_0 = arith.constant 0 : i32
    %c0_i32_1 = arith.constant 0 : i32
    return %c0_i32, %c0_i32_0 : i32, i32
  }
  func.func @transform_6(%arg0: i32, %arg1: i32) -> (i32, i32) {
    %c0_i32 = arith.constant 0 : i32
    %c0_i32_0 = arith.constant 0 : i32
    return %arg0, %c0_i32 : i32, i32
  }
}

module attributes {stable_mosaic.version = 11 : i64} {
  func.func @_linear_kernel(%arg0: i32, %arg1: i32, %arg2: i32, %arg3: memref<16x64xbf16, #tpu.memory_space<vmem>>, %arg4: memref<64x128xbf16, #tpu.memory_space<vmem>>, %arg5: memref<1x128xf32, #tpu.memory_space<vmem>>, %arg6: memref<16x128xbf16, #tpu.memory_space<vmem>>, %arg7: memref<16x128xf32, #tpu.memory_space<vmem>>) attributes {dimension_semantics = [#tpu.dimension_semantics<parallel>, #tpu.dimension_semantics<parallel>, #tpu.dimension_semantics<arbitrary>], iteration_bounds = array<i64: 1, 1, 1>, scalar_prefetch = 0 : i64, scratch_operands = 1 : i64, tpu.core_type = #tpu.core_type<tc>, window_params = [{transform_indices = @transform_0, window_bounds = array<i64: 16, 64>}, {transform_indices = @transform_1, window_bounds = array<i64: 64, 128>}, {transform_indices = @transform_2, window_bounds = array<i64: 1, 128>}, {transform_indices = @transform_3, window_bounds = array<i64: 16, 128>}]} {
    %c0_i32 = arith.constant 0 : i32
    %0 = arith.cmpi eq, %arg2, %c0_i32 : i32
    %1 = arith.extui %0 : i1 to i32
    %c0_i32_0 = arith.constant 0 : i32
    %2 = arith.cmpi ne, %1, %c0_i32_0 : i32
    scf.if %2 {
      %cst_10 = arith.constant 0.000000e+00 : f32
      %12 = vector.broadcast %cst_10 : f32 to vector<16x128xf32>
      %c0_11 = arith.constant 0 : index
      %c0_12 = arith.constant 0 : index
      %13 = vector.load %arg7[%c0_11, %c0_12] : memref<16x128xf32, #tpu.memory_space<vmem>>, vector<16x128xf32>
      tpu.vector_store %arg7[%c0_11, %c0_12], %12 {strides = array<i32>} : memref<16x128xf32, #tpu.memory_space<vmem>>, vector<16x128xf32>,
    } else {
    }
    %c0 = arith.constant 0 : index
    %c0_1 = arith.constant 0 : index
    %3 = vector.load %arg7[%c0, %c0_1] : memref<16x128xf32, #tpu.memory_space<vmem>>, vector<16x128xf32>
    %c0_2 = arith.constant 0 : index
    %c0_3 = arith.constant 0 : index
    %4 = vector.load %arg3[%c0_2, %c0_3] : memref<16x64xbf16, #tpu.memory_space<vmem>>, vector<16x64xbf16>
    %c0_4 = arith.constant 0 : index
    %c0_5 = arith.constant 0 : index
    %5 = vector.load %arg4[%c0_4, %c0_5] : memref<64x128xbf16, #tpu.memory_space<vmem>>, vector<64x128xbf16>
    %cst = arith.constant dense<0.000000e+00> : vector<16x128xf32>
    %6 = tpu.matmul %4, %5, %cst {dimension_numbers = #tpu.dot_dimension_numbers<[1], [0], [0], [1], [0, 0, 1, 1], [], []>} : vector<16x64xbf16>, vector<64x128xbf16>, vector<16x128xf32> -> vector<16x128xf32>
    %7 = arith.addf %3, %6 : vector<16x128xf32>
    %c0_6 = arith.constant 0 : index
    %c0_7 = arith.constant 0 : index
    %8 = vector.load %arg7[%c0_6, %c0_7] : memref<16x128xf32, #tpu.memory_space<vmem>>, vector<16x128xf32>
    tpu.vector_store %arg7[%c0_6, %c0_7], %7 {strides = array<i32>} : memref<16x128xf32, #tpu.memory_space<vmem>>, vector<16x128xf32>,
    %c0_i32_8 = arith.constant 0 : i32
    %9 = arith.cmpi eq, %arg2, %c0_i32_8 : i32
    %10 = arith.extui %9 : i1 to i32
    %c0_i32_9 = arith.constant 0 : i32
    %11 = arith.cmpi ne, %10, %c0_i32_9 : i32
    scf.if %11 {
      %c0_10 = arith.constant 0 : index
      %c0_11 = arith.constant 0 : index
      %12 = vector.load %arg7[%c0_10, %c0_11] : memref<16x128xf32, #tpu.memory_space<vmem>>, vector<16x128xf32>
      %c0_12 = arith.constant 0 : index
      %c0_13 = arith.constant 0 : index
      %13 = vector.load %arg5[%c0_12, %c0_13] : memref<1x128xf32, #tpu.memory_space<vmem>>, vector<1x128xf32>
      %14 = vector.broadcast %13 : vector<1x128xf32> to vector<16x128xf32>
      %15 = arith.addf %12, %14 : vector<16x128xf32>
      %16 = arith.truncf %15 : vector<16x128xf32> to vector<16x128xbf16>
      %c0_14 = arith.constant 0 : index
      %c0_15 = arith.constant 0 : index
      %17 = vector.load %arg6[%c0_14, %c0_15] : memref<16x128xbf16, #tpu.memory_space<vmem>>, vector<16x128xbf16>
      tpu.vector_store %arg6[%c0_14, %c0_15], %16 {strides = array<i32>} : memref<16x128xbf16, #tpu.memory_space<vmem>>, vector<16x128xbf16>,
    } else {
    }
    return
  }
  func.func @transform_0(%arg0: i32, %arg1: i32, %arg2: i32) -> (i32, i32) {
    %c0_i32 = arith.constant 0 : i32
    return %arg0, %arg2 : i32, i32
  }
  func.func @transform_1(%arg0: i32, %arg1: i32, %arg2: i32) -> (i32, i32) {
    %c0_i32 = arith.constant 0 : i32
    return %arg2, %arg1 : i32, i32
  }
  func.func @transform_2(%arg0: i32, %arg1: i32, %arg2: i32) -> (i32, i32) {
    %c0_i32 = arith.constant 0 : i32
    %c0_i32_0 = arith.constant 0 : i32
    return %c0_i32, %arg1 : i32, i32
  }
  func.func @transform_3(%arg0: i32, %arg1: i32, %arg2: i32) -> (i32, i32) {
    %c0_i32 = arith.constant 0 : i32
    return %arg0, %arg1 : i32, i32
  }
}

module attributes {stable_mosaic.version = 11 : i64} {
  func.func @_linear_res_ln_kernel(%arg0: i32, %arg1: i32, %arg2: memref<16x64xbf16, #tpu.memory_space<vmem>>, %arg3: memref<64x64xbf16, #tpu.memory_space<vmem>>, %arg4: memref<1x64xf32, #tpu.memory_space<vmem>>, %arg5: memref<16x64xbf16, #tpu.memory_space<vmem>>, %arg6: memref<1x64xf32, #tpu.memory_space<vmem>>, %arg7: memref<1x64xf32, #tpu.memory_space<vmem>>, %arg8: memref<16x64xbf16, #tpu.memory_space<vmem>>, %arg9: memref<16x64xf32, #tpu.memory_space<vmem>>) attributes {dimension_semantics = [#tpu.dimension_semantics<parallel>, #tpu.dimension_semantics<arbitrary>], iteration_bounds = array<i64: 1, 1>, scalar_prefetch = 0 : i64, scratch_operands = 1 : i64, tpu.core_type = #tpu.core_type<tc>, window_params = [{transform_indices = @transform_0, window_bounds = array<i64: 16, 64>}, {transform_indices = @transform_1, window_bounds = array<i64: 64, 64>}, {pipeline_mode = #tpu.pipeline_mode<synchronous>, transform_indices = @transform_2, window_bounds = array<i64: 1, 64>}, {transform_indices = @transform_3, window_bounds = array<i64: 16, 64>}, {pipeline_mode = #tpu.pipeline_mode<synchronous>, transform_indices = @transform_4, window_bounds = array<i64: 1, 64>}, {pipeline_mode = #tpu.pipeline_mode<synchronous>, transform_indices = @transform_5, window_bounds = array<i64: 1, 64>}, {transform_indices = @transform_6, window_bounds = array<i64: 16, 64>}]} {
    %c0_i32 = arith.constant 0 : i32
    %0 = arith.cmpi eq, %arg1, %c0_i32 : i32
    %1 = arith.extui %0 : i1 to i32
    %c0_i32_0 = arith.constant 0 : i32
    %2 = arith.cmpi ne, %1, %c0_i32_0 : i32
    scf.if %2 {
      %cst_10 = arith.constant 0.000000e+00 : f32
      %12 = vector.broadcast %cst_10 : f32 to vector<16x64xf32>
      %c0_11 = arith.constant 0 : index
      %c0_12 = arith.constant 0 : index
      %13 = vector.load %arg9[%c0_11, %c0_12] : memref<16x64xf32, #tpu.memory_space<vmem>>, vector<16x64xf32>
      tpu.vector_store %arg9[%c0_11, %c0_12], %12 {strides = array<i32>} : memref<16x64xf32, #tpu.memory_space<vmem>>, vector<16x64xf32>,
    } else {
    }
    %c0 = arith.constant 0 : index
    %c0_1 = arith.constant 0 : index
    %3 = vector.load %arg9[%c0, %c0_1] : memref<16x64xf32, #tpu.memory_space<vmem>>, vector<16x64xf32>
    %c0_2 = arith.constant 0 : index
    %c0_3 = arith.constant 0 : index
    %4 = vector.load %arg2[%c0_2, %c0_3] : memref<16x64xbf16, #tpu.memory_space<vmem>>, vector<16x64xbf16>
    %c0_4 = arith.constant 0 : index
    %c0_5 = arith.constant 0 : index
    %5 = vector.load %arg3[%c0_4, %c0_5] : memref<64x64xbf16, #tpu.memory_space<vmem>>, vector<64x64xbf16>
    %cst = arith.constant dense<0.000000e+00> : vector<16x64xf32>
    %6 = tpu.matmul %4, %5, %cst {dimension_numbers = #tpu.dot_dimension_numbers<[1], [0], [0], [1], [0, 0, 1, 1], [], []>} : vector<16x64xbf16>, vector<64x64xbf16>, vector<16x64xf32> -> vector<16x64xf32>
    %7 = arith.addf %3, %6 : vector<16x64xf32>
    %c0_6 = arith.constant 0 : index
    %c0_7 = arith.constant 0 : index
    %8 = vector.load %arg9[%c0_6, %c0_7] : memref<16x64xf32, #tpu.memory_space<vmem>>, vector<16x64xf32>
    tpu.vector_store %arg9[%c0_6, %c0_7], %7 {strides = array<i32>} : memref<16x64xf32, #tpu.memory_space<vmem>>, vector<16x64xf32>,
    %c0_i32_8 = arith.constant 0 : i32
    %9 = arith.cmpi eq, %arg1, %c0_i32_8 : i32
    %10 = arith.extui %9 : i1 to i32
    %c0_i32_9 = arith.constant 0 : i32
    %11 = arith.cmpi ne, %10, %c0_i32_9 : i32
    scf.if %11 {
      %c0_10 = arith.constant 0 : index
      %c0_11 = arith.constant 0 : index
      %12 = vector.load %arg9[%c0_10, %c0_11] : memref<16x64xf32, #tpu.memory_space<vmem>>, vector<16x64xf32>
      %c0_12 = arith.constant 0 : index
      %c0_13 = arith.constant 0 : index
      %13 = vector.load %arg4[%c0_12, %c0_13] : memref<1x64xf32, #tpu.memory_space<vmem>>, vector<1x64xf32>
      %14 = vector.broadcast %13 : vector<1x64xf32> to vector<16x64xf32>
      %15 = arith.addf %12, %14 : vector<16x64xf32>
      %cst_14 = arith.constant 5.000000e-01 : f32
      %16 = vector.broadcast %cst_14 : f32 to vector<16x64xf32>
      %17 = arith.mulf %16, %15 : vector<16x64xf32>
      %cst_15 = arith.constant 0.707106769 : f32
      %18 = vector.broadcast %cst_15 : f32 to vector<16x64xf32>
      %19 = arith.mulf %15, %18 : vector<16x64xf32>
      %20 = math.erf %19 : vector<16x64xf32>
      %cst_16 = arith.constant 1.000000e+00 : f32
      %21 = vector.broadcast %cst_16 : f32 to vector<16x64xf32>
      %22 = arith.addf %21, %20 : vector<16x64xf32>
      %23 = arith.mulf %17, %22 : vector<16x64xf32>
      %c0_17 = arith.constant 0 : index
      %c0_18 = arith.constant 0 : index
      %24 = vector.load %arg5[%c0_17, %c0_18] : memref<16x64xbf16, #tpu.memory_space<vmem>>, vector<16x64xbf16>
      %25 = arith.extf %24 : vector<16x64xbf16> to vector<16x64xf32>
      %26 = arith.addf %23, %25 : vector<16x64xf32>
      %cst_19 = arith.constant dense<0.000000e+00> : vector<16xf32>
      %27 = vector.multi_reduction <add>, %26, %cst_19 [1] : vector<16x64xf32> to vector<16xf32>
      %28 = vector.shape_cast %27 : vector<16xf32> to vector<16x1xf32>
      %cst_20 = arith.constant 6.400000e+01 : f32
      %29 = vector.broadcast %cst_20 : f32 to vector<16x1xf32>
      %30 = arith.divf %28, %29 : vector<16x1xf32>
      %31 = vector.broadcast %30 : vector<16x1xf32> to vector<16x64xf32>
      %32 = arith.subf %26, %31 : vector<16x64xf32>
      %33 = arith.mulf %32, %32 : vector<16x64xf32>
      %cst_21 = arith.constant dense<0.000000e+00> : vector<16xf32>
      %34 = vector.multi_reduction <add>, %33, %cst_21 [1] : vector<16x64xf32> to vector<16xf32>
      %35 = vector.shape_cast %34 : vector<16xf32> to vector<16x1xf32>
      %cst_22 = arith.constant 6.400000e+01 : f32
      %36 = vector.broadcast %cst_22 : f32 to vector<16x1xf32>
      %37 = arith.divf %35, %36 : vector<16x1xf32>
      %38 = vector.broadcast %30 : vector<16x1xf32> to vector<16x64xf32>
      %39 = arith.subf %26, %38 : vector<16x64xf32>
      %cst_23 = arith.constant 9.99999974E-6 : f32
      %40 = vector.broadcast %cst_23 : f32 to vector<16x1xf32>
      %41 = arith.addf %37, %40 : vector<16x1xf32>
      %42 = math.rsqrt %41 : vector<16x1xf32>
      %43 = vector.broadcast %42 : vector<16x1xf32> to vector<16x64xf32>
      %44 = arith.mulf %39, %43 : vector<16x64xf32>
      %c0_24 = arith.constant 0 : index
      %c0_25 = arith.constant 0 : index
      %45 = vector.load %arg6[%c0_24, %c0_25] : memref<1x64xf32, #tpu.memory_space<vmem>>, vector<1x64xf32>
      %46 = vector.broadcast %45 : vector<1x64xf32> to vector<16x64xf32>
      %47 = arith.mulf %44, %46 : vector<16x64xf32>
      %c0_26 = arith.constant 0 : index
      %c0_27 = arith.constant 0 : index
      %48 = vector.load %arg7[%c0_26, %c0_27] : memref<1x64xf32, #tpu.memory_space<vmem>>, vector<1x64xf32>
      %49 = vector.broadcast %48 : vector<1x64xf32> to vector<16x64xf32>
      %50 = arith.addf %47, %49 : vector<16x64xf32>
      %51 = arith.truncf %50 : vector<16x64xf32> to vector<16x64xbf16>
      %c0_28 = arith.constant 0 : index
      %c0_29 = arith.constant 0 : index
      %52 = vector.load %arg8[%c0_28, %c0_29] : memref<16x64xbf16, #tpu.memory_space<vmem>>, vector<16x64xbf16>
      tpu.vector_store %arg8[%c0_28, %c0_29], %51 {strides = array<i32>} : memref<16x64xbf16, #tpu.memory_space<vmem>>, vector<16x64xbf16>,
    } else {
    }
    return
  }
  func.func @transform_0(%arg0: i32, %arg1: i32) -> (i32, i32) {
    %c0_i32 = arith.constant 0 : i32
    return %arg0, %arg1 : i32, i32
  }
  func.func @transform_1(%arg0: i32, %arg1: i32) -> (i32, i32) {
    %c0_i32 = arith.constant 0 : i32
    %c0_i32_0 = arith.constant 0 : i32
    return %arg1, %c0_i32 : i32, i32
  }
  func.func @transform_2(%arg0: i32, %arg1: i32) -> (i32, i32) {
    %c0_i32 = arith.constant 0 : i32
    %c0_i32_0 = arith.constant 0 : i32
    %c0_i32_1 = arith.constant 0 : i32
    return %c0_i32, %c0_i32_0 : i32, i32
  }
  func.func @transform_3(%arg0: i32, %arg1: i32) -> (i32, i32) {
    %c0_i32 = arith.constant 0 : i32
    %c0_i32_0 = arith.constant 0 : i32
    return %arg0, %c0_i32 : i32, i32
  }
  func.func @transform_4(%arg0: i32, %arg1: i32) -> (i32, i32) {
    %c0_i32 = arith.constant 0 : i32
    %c0_i32_0 = arith.constant 0 : i32
    %c0_i32_1 = arith.constant 0 : i32
    return %c0_i32, %c0_i32_0 : i32, i32
  }
  func.func @transform_5(%arg0: i32, %arg1: i32) -> (i32, i32) {
    %c0_i32 = arith.constant 0 : i32
    %c0_i32_0 = arith.constant 0 : i32
    %c0_i32_1 = arith.constant 0 : i32
    return %c0_i32, %c0_i32_0 : i32, i32
  }
  func.func @transform_6(%arg0: i32, %arg1: i32) -> (i32, i32) {
    %c0_i32 = arith.constant 0 : i32
    %c0_i32_0 = arith.constant 0 : i32
    return %arg0, %c0_i32 : i32, i32
  }
}

module attributes {stable_mosaic.version = 11 : i64} {
  func.func @_linear_kernel(%arg0: i32, %arg1: i32, %arg2: i32, %arg3: memref<16x64xbf16, #tpu.memory_space<vmem>>, %arg4: memref<64x64xbf16, #tpu.memory_space<vmem>>, %arg5: memref<1x64xf32, #tpu.memory_space<vmem>>, %arg6: memref<16x64xbf16, #tpu.memory_space<vmem>>, %arg7: memref<16x64xf32, #tpu.memory_space<vmem>>) attributes {dimension_semantics = [#tpu.dimension_semantics<parallel>, #tpu.dimension_semantics<parallel>, #tpu.dimension_semantics<arbitrary>], iteration_bounds = array<i64: 1, 1, 1>, scalar_prefetch = 0 : i64, scratch_operands = 1 : i64, tpu.core_type = #tpu.core_type<tc>, window_params = [{transform_indices = @transform_0, window_bounds = array<i64: 16, 64>}, {transform_indices = @transform_1, window_bounds = array<i64: 64, 64>}, {transform_indices = @transform_2, window_bounds = array<i64: 1, 64>}, {transform_indices = @transform_3, window_bounds = array<i64: 16, 64>}]} {
    %c0_i32 = arith.constant 0 : i32
    %0 = arith.cmpi eq, %arg2, %c0_i32 : i32
    %1 = arith.extui %0 : i1 to i32
    %c0_i32_0 = arith.constant 0 : i32
    %2 = arith.cmpi ne, %1, %c0_i32_0 : i32
    scf.if %2 {
      %cst_10 = arith.constant 0.000000e+00 : f32
      %12 = vector.broadcast %cst_10 : f32 to vector<16x64xf32>
      %c0_11 = arith.constant 0 : index
      %c0_12 = arith.constant 0 : index
      %13 = vector.load %arg7[%c0_11, %c0_12] : memref<16x64xf32, #tpu.memory_space<vmem>>, vector<16x64xf32>
      tpu.vector_store %arg7[%c0_11, %c0_12], %12 {strides = array<i32>} : memref<16x64xf32, #tpu.memory_space<vmem>>, vector<16x64xf32>,
    } else {
    }
    %c0 = arith.constant 0 : index
    %c0_1 = arith.constant 0 : index
    %3 = vector.load %arg7[%c0, %c0_1] : memref<16x64xf32, #tpu.memory_space<vmem>>, vector<16x64xf32>
    %c0_2 = arith.constant 0 : index
    %c0_3 = arith.constant 0 : index
    %4 = vector.load %arg3[%c0_2, %c0_3] : memref<16x64xbf16, #tpu.memory_space<vmem>>, vector<16x64xbf16>
    %c0_4 = arith.constant 0 : index
    %c0_5 = arith.constant 0 : index
    %5 = vector.load %arg4[%c0_4, %c0_5] : memref<64x64xbf16, #tpu.memory_space<vmem>>, vector<64x64xbf16>
    %cst = arith.constant dense<0.000000e+00> : vector<16x64xf32>
    %6 = tpu.matmul %4, %5, %cst {dimension_numbers = #tpu.dot_dimension_numbers<[1], [0], [0], [1], [0, 0, 1, 1], [], []>} : vector<16x64xbf16>, vector<64x64xbf16>, vector<16x64xf32> -> vector<16x64xf32>
    %7 = arith.addf %3, %6 : vector<16x64xf32>
    %c0_6 = arith.constant 0 : index
    %c0_7 = arith.constant 0 : index
    %8 = vector.load %arg7[%c0_6, %c0_7] : memref<16x64xf32, #tpu.memory_space<vmem>>, vector<16x64xf32>
    tpu.vector_store %arg7[%c0_6, %c0_7], %7 {strides = array<i32>} : memref<16x64xf32, #tpu.memory_space<vmem>>, vector<16x64xf32>,
    %c0_i32_8 = arith.constant 0 : i32
    %9 = arith.cmpi eq, %arg2, %c0_i32_8 : i32
    %10 = arith.extui %9 : i1 to i32
    %c0_i32_9 = arith.constant 0 : i32
    %11 = arith.cmpi ne, %10, %c0_i32_9 : i32
    scf.if %11 {
      %c0_10 = arith.constant 0 : index
      %c0_11 = arith.constant 0 : index
      %12 = vector.load %arg7[%c0_10, %c0_11] : memref<16x64xf32, #tpu.memory_space<vmem>>, vector<16x64xf32>
      %c0_12 = arith.constant 0 : index
      %c0_13 = arith.constant 0 : index
      %13 = vector.load %arg5[%c0_12, %c0_13] : memref<1x64xf32, #tpu.memory_space<vmem>>, vector<1x64xf32>
      %14 = vector.broadcast %13 : vector<1x64xf32> to vector<16x64xf32>
      %15 = arith.addf %12, %14 : vector<16x64xf32>
      %16 = arith.truncf %15 : vector<16x64xf32> to vector<16x64xbf16>
      %c0_14 = arith.constant 0 : index
      %c0_15 = arith.constant 0 : index
      %17 = vector.load %arg6[%c0_14, %c0_15] : memref<16x64xbf16, #tpu.memory_space<vmem>>, vector<16x64xbf16>
      tpu.vector_store %arg6[%c0_14, %c0_15], %16 {strides = array<i32>} : memref<16x64xbf16, #tpu.memory_space<vmem>>, vector<16x64xbf16>,
    } else {
    }
    return
  }
  func.func @transform_0(%arg0: i32, %arg1: i32, %arg2: i32) -> (i32, i32) {
    %c0_i32 = arith.constant 0 : i32
    return %arg0, %arg2 : i32, i32
  }
  func.func @transform_1(%arg0: i32, %arg1: i32, %arg2: i32) -> (i32, i32) {
    %c0_i32 = arith.constant 0 : i32
    return %arg2, %arg1 : i32, i32
  }
  func.func @transform_2(%arg0: i32, %arg1: i32, %arg2: i32) -> (i32, i32) {
    %c0_i32 = arith.constant 0 : i32
    %c0_i32_0 = arith.constant 0 : i32
    return %c0_i32, %arg1 : i32, i32
  }
  func.func @transform_3(%arg0: i32, %arg1: i32, %arg2: i32) -> (i32, i32) {
    %c0_i32 = arith.constant 0 : i32
    return %arg0, %arg1 : i32, i32
  }
}

module attributes {stable_mosaic.version = 11 : i64} {
  func.func @_mha_kernel(%arg0: i32, %arg1: i32, %arg2: i32, %arg3: memref<1x8x64xbf16, #tpu.memory_space<vmem>>, %arg4: memref<1x8x128xbf16, #tpu.memory_space<vmem>>, %arg5: memref<1x8x8xbf16, #tpu.memory_space<vmem>>, %arg6: memref<1x8x64xbf16, #tpu.memory_space<vmem>>, %arg7: memref<2x8x1xf32, #tpu.memory_space<vmem>>, %arg8: memref<2x8x1xf32, #tpu.memory_space<vmem>>, %arg9: memref<8x64xf32, #tpu.memory_space<vmem>>) attributes {dimension_semantics = [#tpu.dimension_semantics<parallel>, #tpu.dimension_semantics<parallel>, #tpu.dimension_semantics<arbitrary>], iteration_bounds = array<i64: 2, 1, 1>, scalar_prefetch = 0 : i64, scratch_operands = 3 : i64, tpu.core_type = #tpu.core_type<tc>, window_params = [{transform_indices = @transform_0, window_bounds = array<i64: 1, 8, 64>}, {transform_indices = @transform_1, window_bounds = array<i64: 1, 8, 128>}, {transform_indices = @transform_2, window_bounds = array<i64: 1, 8, 8>}, {transform_indices = @transform_3, window_bounds = array<i64: 1, 8, 64>}]} {
    %c0_i32 = arith.constant 0 : i32
    %0 = arith.cmpi eq, %arg2, %c0_i32 : i32
    %1 = arith.extui %0 : i1 to i32
    %c0_i32_0 = arith.constant 0 : i32
    %2 = arith.cmpi ne, %1, %c0_i32_0 : i32
    scf.if %2 {
      %cst_48 = arith.constant -1.000000e+30 : f32
      %83 = vector.broadcast %cst_48 : f32 to vector<2x8x1xf32>
      %c0_49 = arith.constant 0 : index
      %c0_50 = arith.constant 0 : index
      %c0_51 = arith.constant 0 : index
      %84 = vector.load %arg7[%c0_49, %c0_50, %c0_51] : memref<2x8x1xf32, #tpu.memory_space<vmem>>, vector<2x8x1xf32>
      tpu.vector_store %arg7[%c0_49, %c0_50, %c0_51], %83 {strides = array<i32>} : memref<2x8x1xf32, #tpu.memory_space<vmem>>, vector<2x8x1xf32>,
      %cst_52 = arith.constant 0.000000e+00 : f32
      %85 = vector.broadcast %cst_52 : f32 to vector<2x8x1xf32>
      %c0_53 = arith.constant 0 : index
      %c0_54 = arith.constant 0 : index
      %c0_55 = arith.constant 0 : index
      %86 = vector.load %arg8[%c0_53, %c0_54, %c0_55] : memref<2x8x1xf32, #tpu.memory_space<vmem>>, vector<2x8x1xf32>
      tpu.vector_store %arg8[%c0_53, %c0_54, %c0_55], %85 {strides = array<i32>} : memref<2x8x1xf32, #tpu.memory_space<vmem>>, vector<2x8x1xf32>,
      %cst_56 = arith.constant 0.000000e+00 : f32
      %87 = vector.broadcast %cst_56 : f32 to vector<8x64xf32>
      %c0_57 = arith.constant 0 : index
      %c0_58 = arith.constant 0 : index
      %88 = vector.load %arg9[%c0_57, %c0_58] : memref<8x64xf32, #tpu.memory_space<vmem>>, vector<8x64xf32>
      tpu.vector_store %arg9[%c0_57, %c0_58], %87 {strides = array<i32>} : memref<8x64xf32, #tpu.memory_space<vmem>>, vector<8x64xf32>,
    } else {
    }
    %c0 = arith.constant 0 : index
    %c0_1 = arith.constant 0 : index
    %c0_2 = arith.constant 0 : index
    %3 = vector.load %arg3[%c0, %c0_1, %c0_2] : memref<1x8x64xbf16, #tpu.memory_space<vmem>>, vector<1x8x64xbf16>
    %4 = vector.shape_cast %3 : vector<1x8x64xbf16> to vector<8x64xbf16>
    %c0_3 = arith.constant 0 : index
    %c0_4 = arith.constant 0 : index
    %c0_5 = arith.constant 0 : index
    %5 = vector.load %arg4[%c0_3, %c0_4, %c0_5] : memref<1x8x128xbf16, #tpu.memory_space<vmem>>, vector<1x8x128xbf16>
    %6 = vector.shape_cast %5 : vector<1x8x128xbf16> to vector<8x128xbf16>
    %7 = vector.extract_strided_slice %6 {offsets = [0, 0], sizes = [8, 64], strides = [1, 1]} : vector<8x128xbf16> to vector<8x64xbf16>
    %8 = vector.extract_strided_slice %6 {offsets = [0, 64], sizes = [8, 64], strides = [1, 1]} : vector<8x128xbf16> to vector<8x64xbf16>
    %c0_6 = arith.constant 0 : index
    %c0_7 = arith.constant 0 : index
    %c0_8 = arith.constant 0 : index
    %9 = vector.load %arg5[%c0_6, %c0_7, %c0_8] : memref<1x8x8xbf16, #tpu.memory_space<vmem>>, vector<1x8x8xbf16>
    %10 = vector.shape_cast %9 : vector<1x8x8xbf16> to vector<8x8xbf16>
    %11 = arith.extf %10 : vector<8x8xbf16> to vector<8x8xf32>
    %12 = vector.extract_strided_slice %4 {offsets = [0, 0], sizes = [8, 32], strides = [1, 1]} : vector<8x64xbf16> to vector<8x32xbf16>
    %13 = vector.extract_strided_slice %7 {offsets = [0, 0], sizes = [8, 32], strides = [1, 1]} : vector<8x64xbf16> to vector<8x32xbf16>
    %cst = arith.constant dense<0.000000e+00> : vector<8x8xf32>
    %14 = tpu.matmul %12, %13, %cst {dimension_numbers = #tpu.dot_dimension_numbers<[1], [1], [0], [0], [0, 0, 1, 0], [], []>} : vector<8x32xbf16>, vector<8x32xbf16>, vector<8x8xf32> -> vector<8x8xf32>
    %15 = arith.mulf %14, %11 : vector<8x8xf32>
    %c0_9 = arith.constant 0 : index
    %c0_10 = arith.constant 0 : index
    %c0_11 = arith.constant 0 : index
    %16 = vector.load %arg7[%c0_9, %c0_10, %c0_11] : memref<2x8x1xf32, #tpu.memory_space<vmem>>, vector<1x8x1xf32>
    %17 = vector.shape_cast %16 : vector<1x8x1xf32> to vector<8x1xf32>
    %cst_12 = arith.constant dense<0xFF800000> : vector<8xf32>
    %18 = vector.multi_reduction <maximumf>, %15, %cst_12 [1] : vector<8x8xf32> to vector<8xf32>
    %19 = vector.shape_cast %18 : vector<8xf32> to vector<8x1xf32>
    %20 = arith.maximumf %17, %19 : vector<8x1xf32>
    %21 = arith.subf %17, %20 : vector<8x1xf32>
    %22 = math.exp %21 : vector<8x1xf32>
    %23 = vector.broadcast %20 : vector<8x1xf32> to vector<8x8xf32>
    %24 = arith.subf %15, %23 : vector<8x8xf32>
    %25 = math.exp %24 : vector<8x8xf32>
    %c0_13 = arith.constant 0 : index
    %c0_14 = arith.constant 0 : index
    %c0_15 = arith.constant 0 : index
    %26 = vector.load %arg8[%c0_13, %c0_14, %c0_15] : memref<2x8x1xf32, #tpu.memory_space<vmem>>, vector<1x8x1xf32>
    %27 = vector.shape_cast %26 : vector<1x8x1xf32> to vector<8x1xf32>
    %28 = arith.mulf %22, %27 : vector<8x1xf32>
    %cst_16 = arith.constant dense<0.000000e+00> : vector<8xf32>
    %29 = vector.multi_reduction <add>, %25, %cst_16 [1] : vector<8x8xf32> to vector<8xf32>
    %30 = vector.shape_cast %29 : vector<8xf32> to vector<8x1xf32>
    %31 = arith.addf %28, %30 : vector<8x1xf32>
    %c0_17 = arith.constant 0 : index
    %c0_18 = arith.constant 0 : index
    %c0_19 = arith.constant 0 : index
    %32 = vector.load %arg8[%c0_17, %c0_18, %c0_19] : memref<2x8x1xf32, #tpu.memory_space<vmem>>, vector<1x8x1xf32>
    %33 = vector.shape_cast %32 : vector<1x8x1xf32> to vector<8x1xf32>
    %34 = vector.shape_cast %31 : vector<8x1xf32> to vector<1x8x1xf32>
    tpu.vector_store %arg8[%c0_17, %c0_18, %c0_19], %34 {strides = array<i32>} : memref<2x8x1xf32, #tpu.memory_space<vmem>>, vector<1x8x1xf32>,
    %c0_20 = arith.constant 0 : index
    %c0_21 = arith.constant 0 : index
    %35 = vector.load %arg9[%c0_20, %c0_21] : memref<8x64xf32, #tpu.memory_space<vmem>>, vector<8x32xf32>
    %36 = vector.broadcast %22 : vector<8x1xf32> to vector<8x32xf32>
    %37 = arith.mulf %36, %35 : vector<8x32xf32>
    %38 = arith.truncf %25 : vector<8x8xf32> to vector<8x8xbf16>
    %39 = vector.extract_strided_slice %8 {offsets = [0, 0], sizes = [8, 32], strides = [1, 1]} : vector<8x64xbf16> to vector<8x32xbf16>
    %cst_22 = arith.constant dense<0.000000e+00> : vector<8x32xf32>
    %40 = tpu.matmul %38, %39, %cst_22 {dimension_numbers = #tpu.dot_dimension_numbers<[1], [0], [0], [1], [0, 0, 1, 1], [], []>} : vector<8x8xbf16>, vector<8x32xbf16>, vector<8x32xf32> -> vector<8x32xf32>
    %41 = arith.addf %37, %40 : vector<8x32xf32>
    %c0_23 = arith.constant 0 : index
    %c0_24 = arith.constant 0 : index
    %42 = vector.load %arg9[%c0_23, %c0_24] : memref<8x64xf32, #tpu.memory_space<vmem>>, vector<8x32xf32>
    tpu.vector_store %arg9[%c0_23, %c0_24], %41 {strides = array<i32>} : memref<8x64xf32, #tpu.memory_space<vmem>>, vector<8x32xf32>,
    %c0_25 = arith.constant 0 : index
    %c0_26 = arith.constant 0 : index
    %c0_27 = arith.constant 0 : index
    %43 = vector.load %arg7[%c0_25, %c0_26, %c0_27] : memref<2x8x1xf32, #tpu.memory_space<vmem>>, vector<1x8x1xf32>
    %44 = vector.shape_cast %43 : vector<1x8x1xf32> to vector<8x1xf32>
    %45 = vector.shape_cast %20 : vector<8x1xf32> to vector<1x8x1xf32>
    tpu.vector_store %arg7[%c0_25, %c0_26, %c0_27], %45 {strides = array<i32>} : memref<2x8x1xf32, #tpu.memory_space<vmem>>, vector<1x8x1xf32>,
    %46 = vector.extract_strided_slice %4 {offsets = [0, 32], sizes = [8, 32], strides = [1, 1]} : vector<8x64xbf16> to vector<8x32xbf16>
    %47 = vector.extract_strided_slice %7 {offsets = [0, 32], sizes = [8, 32], strides = [1, 1]} : vector<8x64xbf16> to vector<8x32xbf16>
    %cst_28 = arith.constant dense<0.000000e+00> : vector<8x8xf32>
    %48 = tpu.matmul %46, %47, %cst_28 {dimension_numbers = #tpu.dot_dimension_numbers<[1], [1], [0], [0], [0, 0, 1, 0], [], []>} : vector<8x32xbf16>, vector<8x32xbf16>, vector<8x8xf32> -> vector<8x8xf32>
    %49 = arith.mulf %48, %11 : vector<8x8xf32>
    %c1 = arith.constant 1 : index
    %c0_29 = arith.constant 0 : index
    %c0_30 = arith.constant 0 : index
    %50 = vector.load %arg7[%c1, %c0_29, %c0_30] : memref<2x8x1xf32, #tpu.memory_space<vmem>>, vector<1x8x1xf32>
    %51 = vector.shape_cast %50 : vector<1x8x1xf32> to vector<8x1xf32>
    %cst_31 = arith.constant dense<0xFF800000> : vector<8xf32>
    %52 = vector.multi_reduction <maximumf>, %49, %cst_31 [1] : vector<8x8xf32> to vector<8xf32>
    %53 = vector.shape_cast %52 : vector<8xf32> to vector<8x1xf32>
    %54 = arith.maximumf %51, %53 : vector<8x1xf32>
    %55 = arith.subf %51, %54 : vector<8x1xf32>
    %56 = math.exp %55 : vector<8x1xf32>
    %57 = vector.broadcast %54 : vector<8x1xf32> to vector<8x8xf32>
    %58 = arith.subf %49, %57 : vector<8x8xf32>
    %59 = math.exp %58 : vector<8x8xf32>
    %c1_32 = arith.constant 1 : index
    %c0_33 = arith.constant 0 : index
    %c0_34 = arith.constant 0 : index
    %60 = vector.load %arg8[%c1_32, %c0_33, %c0_34] : memref<2x8x1xf32, #tpu.memory_space<vmem>>, vector<1x8x1xf32>
    %61 = vector.shape_cast %60 : vector<1x8x1xf32> to vector<8x1xf32>
    %62 = arith.mulf %56, %61 : vector<8x1xf32>
    %cst_35 = arith.constant dense<0.000000e+00> : vector<8xf32>
    %63 = vector.multi_reduction <add>, %59, %cst_35 [1] : vector<8x8xf32> to vector<8xf32>
    %64 = vector.shape_cast %63 : vector<8xf32> to vector<8x1xf32>
    %65 = arith.addf %62, %64 : vector<8x1xf32>
    %c1_36 = arith.constant 1 : index
    %c0_37 = arith.constant 0 : index
    %c0_38 = arith.constant 0 : index
    %66 = vector.load %arg8[%c1_36, %c0_37, %c0_38] : memref<2x8x1xf32, #tpu.memory_space<vmem>>, vector<1x8x1xf32>
    %67 = vector.shape_cast %66 : vector<1x8x1xf32> to vector<8x1xf32>
    %68 = vector.shape_cast %65 : vector<8x1xf32> to vector<1x8x1xf32>
    tpu.vector_store %arg8[%c1_36, %c0_37, %c0_38], %68 {strides = array<i32>} : memref<2x8x1xf32, #tpu.memory_space<vmem>>, vector<1x8x1xf32>,
    %c0_39 = arith.constant 0 : index
    %c32 = arith.constant 32 : index
    %69 = vector.load %arg9[%c0_39, %c32] : memref<8x64xf32, #tpu.memory_space<vmem>>, vector<8x32xf32>
    %70 = vector.broadcast %56 : vector<8x1xf32> to vector<8x32xf32>
    %71 = arith.mulf %70, %69 : vector<8x32xf32>
    %72 = arith.truncf %59 : vector<8x8xf32> to vector<8x8xbf16>
    %73 = vector.extract_strided_slice %8 {offsets = [0, 32], sizes = [8, 32], strides = [1, 1]} : vector<8x64xbf16> to vector<8x32xbf16>
    %cst_40 = arith.constant dense<0.000000e+00> : vector<8x32xf32>
    %74 = tpu.matmul %72, %73, %cst_40 {dimension_numbers = #tpu.dot_dimension_numbers<[1], [0], [0], [1], [0, 0, 1, 1], [], []>} : vector<8x8xbf16>, vector<8x32xbf16>, vector<8x32xf32> -> vector<8x32xf32>
    %75 = arith.addf %71, %74 : vector<8x32xf32>
    %c0_41 = arith.constant 0 : index
    %c32_42 = arith.constant 32 : index
    %76 = vector.load %arg9[%c0_41, %c32_42] : memref<8x64xf32, #tpu.memory_space<vmem>>, vector<8x32xf32>
    tpu.vector_store %arg9[%c0_41, %c32_42], %75 {strides = array<i32>} : memref<8x64xf32, #tpu.memory_space<vmem>>, vector<8x32xf32>,
    %c1_43 = arith.constant 1 : index
    %c0_44 = arith.constant 0 : index
    %c0_45 = arith.constant 0 : index
    %77 = vector.load %arg7[%c1_43, %c0_44, %c0_45] : memref<2x8x1xf32, #tpu.memory_space<vmem>>, vector<1x8x1xf32>
    %78 = vector.shape_cast %77 : vector<1x8x1xf32> to vector<8x1xf32>
    %79 = vector.shape_cast %54 : vector<8x1xf32> to vector<1x8x1xf32>
    tpu.vector_store %arg7[%c1_43, %c0_44, %c0_45], %79 {strides = array<i32>} : memref<2x8x1xf32, #tpu.memory_space<vmem>>, vector<1x8x1xf32>,
    %c0_i32_46 = arith.constant 0 : i32
    %80 = arith.cmpi eq, %arg2, %c0_i32_46 : i32
    %81 = arith.extui %80 : i1 to i32
    %c0_i32_47 = arith.constant 0 : i32
    %82 = arith.cmpi ne, %81, %c0_i32_47 : i32
    scf.if %82 {
      %c0_48 = arith.constant 0 : index
      %c0_49 = arith.constant 0 : index
      %83 = vector.load %arg9[%c0_48, %c0_49] : memref<8x64xf32, #tpu.memory_space<vmem>>, vector<8x32xf32>
      %c0_50 = arith.constant 0 : index
      %c0_51 = arith.constant 0 : index
      %c0_52 = arith.constant 0 : index
      %84 = vector.load %arg8[%c0_50, %c0_51, %c0_52] : memref<2x8x1xf32, #tpu.memory_space<vmem>>, vector<1x8x1xf32>
      %85 = vector.shape_cast %84 : vector<1x8x1xf32> to vector<8x1xf32>
      %86 = tpu.reciprocal %85 {approx = true} : vector<8x1xf32> -> vector<8x1xf32>
      %87 = vector.broadcast %86 : vector<8x1xf32> to vector<8x32xf32>
      %88 = arith.mulf %83, %87 : vector<8x32xf32>
      %c0_53 = arith.constant 0 : index
      %c0_54 = arith.constant 0 : index
      %89 = vector.load %arg9[%c0_53, %c0_54] : memref<8x64xf32, #tpu.memory_space<vmem>>, vector<8x32xf32>
      tpu.vector_store %arg9[%c0_53, %c0_54], %88 {strides = array<i32>} : memref<8x64xf32, #tpu.memory_space<vmem>>, vector<8x32xf32>,
      %c0_55 = arith.constant 0 : index
      %c32_56 = arith.constant 32 : index
      %90 = vector.load %arg9[%c0_55, %c32_56] : memref<8x64xf32, #tpu.memory_space<vmem>>, vector<8x32xf32>
      %c1_57 = arith.constant 1 : index
      %c0_58 = arith.constant 0 : index
      %c0_59 = arith.constant 0 : index
      %91 = vector.load %arg8[%c1_57, %c0_58, %c0_59] : memref<2x8x1xf32, #tpu.memory_space<vmem>>, vector<1x8x1xf32>
      %92 = vector.shape_cast %91 : vector<1x8x1xf32> to vector<8x1xf32>
      %93 = tpu.reciprocal %92 {approx = true} : vector<8x1xf32> -> vector<8x1xf32>
      %94 = vector.broadcast %93 : vector<8x1xf32> to vector<8x32xf32>
      %95 = arith.mulf %90, %94 : vector<8x32xf32>
      %c0_60 = arith.constant 0 : index
      %c32_61 = arith.constant 32 : index
      %96 = vector.load %arg9[%c0_60, %c32_61] : memref<8x64xf32, #tpu.memory_space<vmem>>, vector<8x32xf32>
      tpu.vector_store %arg9[%c0_60, %c32_61], %95 {strides = array<i32>} : memref<8x64xf32, #tpu.memory_space<vmem>>, vector<8x32xf32>,
      %c0_62 = arith.constant 0 : index
      %c0_63 = arith.constant 0 : index
      %97 = vector.load %arg9[%c0_62, %c0_63] : memref<8x64xf32, #tpu.memory_space<vmem>>, vector<8x64xf32>
      %98 = arith.truncf %97 : vector<8x64xf32> to vector<8x64xbf16>
      %c0_64 = arith.constant 0 : index
      %c0_65 = arith.constant 0 : index
      %c0_66 = arith.constant 0 : index
      %99 = vector.load %arg6[%c0_64, %c0_65, %c0_66] : memref<1x8x64xbf16, #tpu.memory_space<vmem>>, vector<1x8x64xbf16>
      %100 = vector.shape_cast %99 : vector<1x8x64xbf16> to vector<8x64xbf16>
      %101 = vector.shape_cast %98 : vector<8x64xbf16> to vector<1x8x64xbf16>
      tpu.vector_store %arg6[%c0_64, %c0_65, %c0_66], %101 {strides = array<i32>} : memref<1x8x64xbf16, #tpu.memory_space<vmem>>, vector<1x8x64xbf16>,
    } else {
    }
    return
  }
  func.func @transform_0(%arg0: i32, %arg1: i32, %arg2: i32) -> (i32, i32, i32) {
    %c0_i32 = arith.constant 0 : i32
    %c0_i32_0 = arith.constant 0 : i32
    return %arg0, %arg1, %c0_i32 : i32, i32, i32
  }
  func.func @transform_1(%arg0: i32, %arg1: i32, %arg2: i32) -> (i32, i32, i32) {
    %c0_i32 = arith.constant 0 : i32
    %c0_i32_0 = arith.constant 0 : i32
    return %arg0, %arg2, %c0_i32 : i32, i32, i32
  }
  func.func @transform_2(%arg0: i32, %arg1: i32, %arg2: i32) -> (i32, i32, i32) {
    %c0_i32 = arith.constant 0 : i32
    %c0_i32_0 = arith.constant 0 : i32
    return %c0_i32, %arg1, %arg2 : i32, i32, i32
  }
  func.func @transform_3(%arg0: i32, %arg1: i32, %arg2: i32) -> (i32, i32, i32) {
    %c0_i32 = arith.constant 0 : i32
    %c0_i32_0 = arith.constant 0 : i32
    return %arg0, %arg1, %c0_i32 : i32, i32, i32
  }
}

module attributes {stable_mosaic.version = 11 : i64} {
  func.func @_linear_kernel(%arg0: i32, %arg1: i32, %arg2: i32, %arg3: memref<16x64xbf16, #tpu.memory_space<vmem>>, %arg4: memref<64x32xbf16, #tpu.memory_space<vmem>>, %arg5: memref<1x32xf32, #tpu.memory_space<vmem>>, %arg6: memref<16x32xbf16, #tpu.memory_space<vmem>>, %arg7: memref<16x32xf32, #tpu.memory_space<vmem>>) attributes {dimension_semantics = [#tpu.dimension_semantics<parallel>, #tpu.dimension_semantics<parallel>, #tpu.dimension_semantics<arbitrary>], iteration_bounds = array<i64: 1, 1, 1>, scalar_prefetch = 0 : i64, scratch_operands = 1 : i64, tpu.core_type = #tpu.core_type<tc>, window_params = [{transform_indices = @transform_0, window_bounds = array<i64: 16, 64>}, {transform_indices = @transform_1, window_bounds = array<i64: 64, 32>}, {transform_indices = @transform_2, window_bounds = array<i64: 1, 32>}, {transform_indices = @transform_3, window_bounds = array<i64: 16, 32>}]} {
    %c0_i32 = arith.constant 0 : i32
    %0 = arith.cmpi eq, %arg2, %c0_i32 : i32
    %1 = arith.extui %0 : i1 to i32
    %c0_i32_0 = arith.constant 0 : i32
    %2 = arith.cmpi ne, %1, %c0_i32_0 : i32
    scf.if %2 {
      %cst_10 = arith.constant 0.000000e+00 : f32
      %12 = vector.broadcast %cst_10 : f32 to vector<16x32xf32>
      %c0_11 = arith.constant 0 : index
      %c0_12 = arith.constant 0 : index
      %13 = vector.load %arg7[%c0_11, %c0_12] : memref<16x32xf32, #tpu.memory_space<vmem>>, vector<16x32xf32>
      tpu.vector_store %arg7[%c0_11, %c0_12], %12 {strides = array<i32>} : memref<16x32xf32, #tpu.memory_space<vmem>>, vector<16x32xf32>,
    } else {
    }
    %c0 = arith.constant 0 : index
    %c0_1 = arith.constant 0 : index
    %3 = vector.load %arg7[%c0, %c0_1] : memref<16x32xf32, #tpu.memory_space<vmem>>, vector<16x32xf32>
    %c0_2 = arith.constant 0 : index
    %c0_3 = arith.constant 0 : index
    %4 = vector.load %arg3[%c0_2, %c0_3] : memref<16x64xbf16, #tpu.memory_space<vmem>>, vector<16x64xbf16>
    %c0_4 = arith.constant 0 : index
    %c0_5 = arith.constant 0 : index
    %5 = vector.load %arg4[%c0_4, %c0_5] : memref<64x32xbf16, #tpu.memory_space<vmem>>, vector<64x32xbf16>
    %cst = arith.constant dense<0.000000e+00> : vector<16x32xf32>
    %6 = tpu.matmul %4, %5, %cst {dimension_numbers = #tpu.dot_dimension_numbers<[1], [0], [0], [1], [0, 0, 1, 1], [], []>} : vector<16x64xbf16>, vector<64x32xbf16>, vector<16x32xf32> -> vector<16x32xf32>
    %7 = arith.addf %3, %6 : vector<16x32xf32>
    %c0_6 = arith.constant 0 : index
    %c0_7 = arith.constant 0 : index
    %8 = vector.load %arg7[%c0_6, %c0_7] : memref<16x32xf32, #tpu.memory_space<vmem>>, vector<16x32xf32>
    tpu.vector_store %arg7[%c0_6, %c0_7], %7 {strides = array<i32>} : memref<16x32xf32, #tpu.memory_space<vmem>>, vector<16x32xf32>,
    %c0_i32_8 = arith.constant 0 : i32
    %9 = arith.cmpi eq, %arg2, %c0_i32_8 : i32
    %10 = arith.extui %9 : i1 to i32
    %c0_i32_9 = arith.constant 0 : i32
    %11 = arith.cmpi ne, %10, %c0_i32_9 : i32
    scf.if %11 {
      %c0_10 = arith.constant 0 : index
      %c0_11 = arith.constant 0 : index
      %12 = vector.load %arg7[%c0_10, %c0_11] : memref<16x32xf32, #tpu.memory_space<vmem>>, vector<16x32xf32>
      %c0_12 = arith.constant 0 : index
      %c0_13 = arith.constant 0 : index
      %13 = vector.load %arg5[%c0_12, %c0_13] : memref<1x32xf32, #tpu.memory_space<vmem>>, vector<1x32xf32>
      %14 = vector.broadcast %13 : vector<1x32xf32> to vector<16x32xf32>
      %15 = arith.addf %12, %14 : vector<16x32xf32>
      %16 = arith.truncf %15 : vector<16x32xf32> to vector<16x32xbf16>
      %c0_14 = arith.constant 0 : index
      %c0_15 = arith.constant 0 : index
      %17 = vector.load %arg6[%c0_14, %c0_15] : memref<16x32xbf16, #tpu.memory_space<vmem>>, vector<16x32xbf16>
      tpu.vector_store %arg6[%c0_14, %c0_15], %16 {strides = array<i32>} : memref<16x32xbf16, #tpu.memory_space<vmem>>, vector<16x32xbf16>,
    } else {
    }
    return
  }
  func.func @transform_0(%arg0: i32, %arg1: i32, %arg2: i32) -> (i32, i32) {
    %c0_i32 = arith.constant 0 : i32
    return %arg0, %arg2 : i32, i32
  }
  func.func @transform_1(%arg0: i32, %arg1: i32, %arg2: i32) -> (i32, i32) {
    %c0_i32 = arith.constant 0 : i32
    return %arg2, %arg1 : i32, i32
  }
  func.func @transform_2(%arg0: i32, %arg1: i32, %arg2: i32) -> (i32, i32) {
    %c0_i32 = arith.constant 0 : i32
    %c0_i32_0 = arith.constant 0 : i32
    return %c0_i32, %arg1 : i32, i32
  }
  func.func @transform_3(%arg0: i32, %arg1: i32, %arg2: i32) -> (i32, i32) {
    %c0_i32 = arith.constant 0 : i32
    return %arg0, %arg1 : i32, i32
  }
}

</mosaic_0001>

<bundles_post_ra>
// kernel: transformer_controller_forward.29
= control target key start
LH: loop header
LB: loop body
LE: loop exit
PB: predicated region body
PF: predicated region fallthrough
CT: control target
= control target key end

     0   :  { %vm22_vm0 = vcmask 523264   ;;  %v235_v1 = vmov 0   ;;  %v236_v2 = vmov 0.0   ;;  %v149_v11 = vlaneseq  ;;  %s237_s10 = smov 64   ;;  %s312_s1 = inlined_call_operand.vmem [shape: bf16[64,192], index: 1, kind: input, shape index: {}]   ;;  %s313_s0 = inlined_call_operand.vmem [shape: bf16[16,64], index: 0, kind: input, shape index: {}]   ;;  %s314_s2 = inlined_call_operand.vmem [shape: f32[1,192], index: 2, kind: input, shape index: {}]   ;;  %s315_s3 = inlined_call_operand.vmem [shape: bf16[16,64], index: 3, kind: output, shape index: {0}]   ;;  %s316_s4 = inlined_call_operand.vmem [shape: bf16[16,128], index: 4, kind: output, shape index: {1}]  }
   0x1   :  { %v222_v0 = vld [vmem:[%s312_s1 + $0x4] ss:$8 sps:$4 sm:$0xff]   ;;  %121 = vmatprep.mubr.bf16.mxu0 %v235_v1  ;;  %23 = vst.msk [vmem:[#allocation2 + $0x8] sm:$0xff] %vm22_vm0, %v236_v2  ;;  %25 = vst.msk [vmem:[#allocation2 + $0x18] sm:$0xff] %vm22_vm0, %v236_v2  ;;  %v224_v3 = vld [vmem:[%s312_s1] ss:$8 sps:$4 sm:$0xff]  }
   0x2   :  { %89 = vmatprep.subr.bf16.mxu0 %v222_v0  ;;  %v225_v4 = vld [vmem:[%s312_s1 + $0x14] ss:$8 sps:$4 sm:$0xff]   ;;  %v227_v5 = vld [vmem:[%s312_s1 + $0x10] ss:$8 sps:$4 sm:$0xff]   ;;  %v228_v6 = vld [vmem:[%s312_s1 + $0x24] ss:$8 sps:$4 sm:$0xff]  }
   0x3   :  { %90 = vmatpush1.bf16.msra.mxu0 %v224_v3  ;;  %v230_v7 = vld [vmem:[%s312_s1 + $0x20] ss:$8 sps:$4 sm:$0xff]   ;;  %v231_v8 = vld [vmem:[%s312_s1 + $0x34] ss:$8 sps:$4 sm:$0xff]   ;;  %v233_v9 = vld [vmem:[%s312_s1 + $0x30] ss:$8 sps:$4 sm:$0xff]  }
   0x4   :  { %91 = vmatprep.subr.bf16.mxu0 %v225_v4  ;;  %v234_v10 = vld [vmem:[%s313_s0] sm:$0xff]   ;;  %v150_v12 = vshrl.u32 %v149_v11, 7  ;;  %vm171_vm1 = vcmask 519168  }
   0x5   :  { %v147_v14 = vld [vmem:[%s314_s2] sm:$0x3] }
   0x6   :  { %v151_v13 = vsub.s32 0, %v150_v12  ;;  %v155_v25 = vsub.s32 1, %v150_v12 }
   0x7   :  { %92 = vmatpush1.bf16.msra.mxu0 %v227_v5 }
   0x8   :  { %93 = vmatprep.subr.bf16.mxu0 %v228_v6  ;;  %v27_v15 = vld [vmem:[#allocation2 + $0x8] sm:$0xff]  ;;  %v152_v16 = vrot.slane %v147_v14, %v151_v13  ;;  %v29_v19 = vld [vmem:[#allocation2 + $0x18] sm:$0xff]  ;;  %v156_v29 = vrot.slane %v147_v14, %v155_v25 }
   0xb   :  { %94 = vmatpush1.bf16.msra.mxu0 %v230_v7 }
   0xc   :  { %95 = vmatprep.subr.bf16.mxu0 %v231_v8 }
   0xf   :  { %96 = vmatpush1.bf16.msra.mxu0 %v233_v9 }
  0x12   :  { %210 = vmatmul.mubr.msk.bf16.vlgmr.msra.gmra.mrb[0].mxu0 %vm22_vm0, %v234_v10 }
  0xe5   :  { %v123_v17 = vpop.f32.mrb[0].mxu0 }
  0xe6   :  { %v125_v18 = vpop.f32.mrb[1].mxu0  ;;  %v159_v23 = vadd.f32 %v152_v16, %v123_v17 }
  0xe7   :  { %v133_v20 = vadd.f32 %v125_v18, %v27_v15  ;;  %v127_v21 = vpop.f32.mrb[2].mxu0 }
  0xe8   :  { %v129_v22 = vpop.f32.mrb[3].mxu0  ;;  %v215_v26 = vpack.c.bf16 %v159_v23, %v159_v23  ;;  %v161_v27 = vadd.f32 %v152_v16, %v127_v21 }
  0xe9   :  { %137 = vst.msk [vmem:[#allocation2 + $0x8] sm:$0xff] %vm22_vm0, %v133_v20  ;;  %v135_v24 = vadd.f32 %v129_v22, %v29_v19 }
  0xea   :  { %172 = vst.msk [vmem:[%s315_s3] sm:$0xf] %vm171_vm1, %v215_v26  ;;  %v216_v28 = vpack.c.bf16 %v161_v27, %v161_v27 }
  0xeb   :  { %139 = vst.msk [vmem:[#allocation2 + $0x18] sm:$0xff] %vm22_vm0, %v135_v24 }
  0xec   :  { %173 = vst.msk [vmem:[%s315_s3 + $0x4] sm:$0xf] %vm171_vm1, %v216_v28 }
  0xf0   :  { %v144_v30 = vld [vmem:[#allocation2 + $0x8] sm:$0xff] }
  0xf1   :  { %v160_v31 = vadd.f32 %v156_v29, %v144_v30 }
  0xf2   :  { %v146_v32 = vld [vmem:[#allocation2 + $0x18] sm:$0xff] }
  0xf3   :  { %v217_v33 = vpack.c.bf16 %v160_v31, %v159_v23  ;;  %v162_v34 = vadd.f32 %v156_v29, %v146_v32 }
  0xf5   :  { %180 = vrot.lane.b32.xlu0 %v217_v33, %s237_s10  ;;  %v218_v35 = vpack.c.bf16 %v162_v34, %v161_v27 }
  0xf9   :  { %182 = vrot.lane.b32.xlu0 %v218_v35, %s237_s10 }
 0x167   :  { %v181_v36 = vpop.permute.xlu0 %180 }
 0x168   :  { %v184_v37 = vrot.slane %v181_v36, 4 }
 0x16a   :  { %v187_v38 = vsel %vm22_vm0, %v181_v36, %v184_v37 }
 0x16b   :  { %191 = vst [vmem:[%s316_s4] sm:$0xf] %v187_v38  ;;  %v183_v39 = vpop.permute.xlu0 %182 }
 0x16c   :  { %v185_v40 = vrot.slane %v183_v39, 4 }
 0x16e   :  { %v188_v41 = vsel %vm22_vm0, %v183_v39, %v185_v40 }
 0x16f   :  { %192 = vst [vmem:[%s316_s4 + $0x4] sm:$0xf] %v188_v41 }

// kernel: transformer_controller_forward.27
= control target key start
LH: loop header
LB: loop body
LE: loop exit
PB: predicated region body
PF: predicated region fallthrough
CT: control target
= control target key end

     0   :  { %vm19_vm0 = vcmask 523264   ;;  %v151_v0 = vmov 0.0   ;;  %vm152_vm1 = vmmov 0   ;;  %vm47_vm2 = vcmask 261120   ;;  %s195_s1 = inlined_call_operand.vmem [shape: bf16[32,64], index: 1, kind: input, shape index: {}]   ;;  %s196_s0 = inlined_call_operand.vmem [shape: bf16[16,32], index: 0, kind: input, shape index: {}]   ;;  %s197_s2 = inlined_call_operand.vmem [shape: f32[1,64], index: 2, kind: input, shape index: {}]   ;;  %s198_s3 = inlined_call_operand.vmem [shape: bf16[16,64], index: 3, kind: output, shape index: {}]  }
   0x1   :  { %138 = vmatprep.subr.bf16.mxu0 %v151_v0  ;;  %v148_v1 = vld [vmem:[%s195_s1] sm:$0xff]   ;;  %142 = vmatprep.mubr.msk.bf16.mxu0 %vm152_vm1, %v151_v0  ;;  %20 = vst.msk [vmem:[#allocation2] sm:$0xff] %vm19_vm0, %v151_v0  ;;  %21 = vst.msk [vmem:[#allocation2 + $0x8] sm:$0xff] %vm19_vm0, %v151_v0  ;;  %v149_v2 = vld [vmem:[%s195_s1 + $0x8] sm:$0xff]   ;;  %vm119_vm3 = vcmask 519168  }
   0x2   :  { %139 = vmatpush3.bf16.msra.mxu0 %v148_v1  ;;  %v150_v3 = vld [vmem:[%s196_s0] sm:$0xff]  }
   0x3   :  { %140 = vmatprep.subr.bf16.mxu0 %v151_v0  ;;  %v130_v12 = vld [vmem:[%s197_s2] ss:$0 sm:$0xff] }
   0x6   :  { %141 = vmatpush3.bf16.msra.mxu0 %v149_v2 }
   0x8   :  { %v22_v4 = vld [vmem:[#allocation2] sm:$0xff]  ;;  %v23_v6 = vld [vmem:[#allocation2 + $0x8] sm:$0xff] }
   0x9   :  { %143 = vmatmul.mubr.msk.bf16.vlgmr.msra.gmra.mrb[0].mxu0 %vm47_vm2, %v150_v3 }
  0xdc   :  { %v85_v5 = vpop.f32.mrb[0].mxu0 }
  0xdd   :  { %v92_v7 = vadd.f32 %v85_v5, %v22_v4  ;;  %v144_v8 = vpop.f32.mrb[1].mxu0 }
  0xde   :  { %v88_v9 = vpop.f32.mrb[2].mxu0 }
  0xdf   :  { %95 = vst.msk [vmem:[#allocation2] sm:$0xff] %vm19_vm0, %v92_v7  ;;  %v93_v10 = vadd.f32 %v88_v9, %v23_v6  ;;  %v145_v11 = vpop.f32.mrb[3].mxu0 }
  0xe1   :  { %96 = vst.msk [vmem:[#allocation2 + $0x8] sm:$0xff] %vm19_vm0, %v93_v10 }
  0xe6   :  { %v100_v13 = vld [vmem:[#allocation2] sm:$0xff] }
  0xe7   :  { %v109_v14 = vadd.f32 %v130_v12, %v100_v13 }
  0xe8   :  { %v101_v15 = vld [vmem:[#allocation2 + $0x8] sm:$0xff] }
  0xe9   :  { %v133_v16 = vpack.c.bf16 %v109_v14, %v109_v14  ;;  %v110_v17 = vadd.f32 %v130_v12, %v101_v15 }
  0xeb   :  { %120 = vst.msk [vmem:[%s198_s3] sm:$0xf] %vm119_vm3, %v133_v16  ;;  %v134_v18 = vpack.c.bf16 %v110_v17, %v110_v17 }
  0xed   :  { %121 = vst.msk [vmem:[%s198_s3 + $0x4] sm:$0xf] %vm119_vm3, %v134_v18 }

// kernel: transformer_controller_forward.30
= control target key start
LH: loop header
LB: loop body
LE: loop exit
PB: predicated region body
PF: predicated region fallthrough
CT: control target
= control target key end

     0   :  { %s755_s9 = smov 0   ;;  %s757_s10 = smov 0   ;;  %s835_s0 = inlined_call_operand.vmem [shape: bf16[2,8,64], index: 0, kind: input, shape index: {}]   ;;  %s836_s1 = inlined_call_operand.vmem [shape: bf16[2,8,128], index: 1, kind: input, shape index: {}]   ;;  %s837_s2 = inlined_call_operand.vmem [shape: bf16[2,8,64], index: 2, kind: output, shape index: {}]  }
   0x1   :  { %s759_s11 = smov 0  }
   0x2 LB: > { %s31_s12 = sadd.s32 1, %s727_s10  ;;  %p619_p0 = scmp.ge.s32.totalorder %s731_s11, 1  ;;  %s731_s11 = sphi %s759_s11, %s12_s11   ;;  %s727_s10 = sphi %s757_s10, %s839_s10   ;;  %s723_s9 = sphi %s755_s9, %s838_s9  }
   0x3   : > { %p33_p1 = scmp.ge.s32.totalorder %s31_s12, 2  ;;  %p151_p2 = scmp.lt.s32.totalorder %s731_s11, 3 }
   0x5   : > { %s841_s12 = smov (%p33_p1, %s31_s12), 0  ;;  %p152_p3 = pnand %p619_p0, %p151_p2 }
   0x6   : > { %p184_p4 = scmp.lt.s32.totalorder (!%p152_p3), %s723_s9, 1  ;;  %v733_v0 = vmov (!%p152_p3), 0.0   ;;  %vm734_vm0 = vmmov (!%p152_p3), 0   ;;  %vm219_vm1 = vcmask (!%p152_p3), 261120   ;;  %vm210_vm2 = vcmask (!%p152_p3), 7168   ;;  %s737_s20 = smov (!%p152_p3), 64  }
   0x7   : > { %155 = sbr.rel (%p152_p3) target bundleno = 1405 (0x57d), region = 28  ;;  %639 = vmatprep.subr.bf16.mxu0 (!%p152_p3), %v733_v0  ;;  %641 = vmatprep.mubr.msk.bf16.mxu0 (!%p152_p3), %vm734_vm0, %v733_v0  ;;  %v735_v4 = vmov (!%p152_p3), -1e+30   ;;  %213 = vst.msk [vmem:[#allocation3] sm:$0xff] (!%p152_p3), %vm210_vm2, %v733_v0  ;;  %214 = vst.msk [vmem:[#allocation3 + $0x8] sm:$0xff] (!%p152_p3), %vm210_vm2, %v733_v0  ;;  %vm267_vm3 = vcmask (!%p152_p3), 64512  }
   0x8   : > { %645 = vmatprep.subr.bf16.mxu1 (!%p152_p3), %v733_v0  ;;  %647 = vmatprep.mubr.msk.bf16.mxu1 (!%p152_p3), %vm734_vm0, %v733_v0  ;;  %211 = vst.msk [vmem:[#allocation2] sm:$0xff] (!%p152_p3), %vm210_vm2, %v735_v4  ;;  %212 = vst.msk [vmem:[#allocation2 + $0x8] sm:$0xff] (!%p152_p3), %vm210_vm2, %v735_v4  ;;  %v736_v10 = vmov (!%p152_p3), 0   ;;  %s738_s21 = smov (!%p152_p3), 96   ;;  %vm307_vm4 = vcmask (!%p152_p3), 1043456   ;;  %s739_s22 = smov (!%p152_p3), 32  }
   0x9   : > { %694 = vset.pattern.permute.xlu0 (!%p152_p3), %v736_v10  ;;  %695 = vset.pattern.permute.xlu1 (!%p152_p3), %v736_v10  ;;  %vm215_vm5 = vcmask (!%p152_p3), 523264   ;;  %vm493_vm6 = vcmask (!%p152_p3), 523520   ;;  %vm521_vm7 = vcmask (!%p152_p3), 519168  }
   0xa   : > { %216 = vst.msk [vmem:[#allocation4] sm:$0xff] (!%p152_p3), %vm215_vm5, %v733_v0 }
   0xe   : > { %s843_s9 = smov (!%p184_p4, %s723_s9), 1  ;;  %v283_v53 = vld [vmem:[#allocation3] sm:$0xff]  ;;  %v425_v61 = vld [vmem:[#allocation3 + $0x8] sm:$0xff] }
   0xf   : > { %s779_s13 = sshll.u32 %s843_s9, 2  ;;  %v266_v13 = vld [vmem:[#allocation2] sm:$0xff]  ;;  %v408_v36 = vld [vmem:[#allocation2 + $0x8] sm:$0xff] }
  0x10   : > { %s197_s16 = scalar_lea.vmem %s836_s1, %s779_s13  ;;  %s190_s19 = scalar_lea.vmem %s835_s0, %s779_s13 }
  0x11   : > { %v218_v1 = vld [vmem:[%s197_s16] sm:$0xf]  ;;  %s204_s25 = scalar_lea.vmem %s837_s2, %s779_s13 }
  0x12   : > { %v224_v2 = vsel %vm219_vm1, %v218_v1, 0  ;;  %v217_v3 = vld [vmem:[%s190_s19] sm:$0xf]  ;;  %v624_v11 = vcombine.low %v218_v1, %v218_v1 }
  0x13   : > { %640 = vmatpush3.bf16.xpose.msra.mxu0 %v224_v2  ;;  %v626_v12 = vcombine.low %v217_v3, %v217_v3  ;;  %v291_v57 = vld [vmem:[#allocation4] sm:$0xff] }
  0x14   : > { %657 = vmatprep.subr.bf16.mxu0 %v733_v0  ;;  %302 = vrot.lane.b32.xlu1 %v624_v11, %s737_s20 }
  0x18   : > { %359 = vrot.lane.b32.xlu1 %v624_v11, %s738_s21 }
  0x1a   : > { %642 = vmatmul.mubr.msk.bf16.vlgmr.msra.gmra.mrb[0].mxu0 %vm219_vm1, %v217_v3 }
  0x1b   : > { %659 = vmatprep.mubr.msk.bf16.mxu0 %vm734_vm0, %v733_v0 }
  0x1c   : > { %357 = vrot.lane.b32.xlu1 %v626_v12, %s738_s21 }
  0x86   : > { %v303_v17 = vpop.permute.xlu1 %302 }
  0x87   : > { %v309_v18 = vsel %vm307_vm4, %v303_v17, 0 }
  0x88   : > { %646 = vmatpush3.bf16.msra.mxu1 %v309_v18 }
  0x89   : > { %651 = vmatprep.subr.bf16.mxu1 %v733_v0 }
  0x8a   : > { %v360_v22 = vpop.permute.xlu1 %359 }
  0x8b   : > { %v365_v24 = vsel %vm219_vm1, %v360_v22, 0 }
  0x8e   : > { %v358_v26 = vpop.permute.xlu1 %357 }
  0xed   : > { %v260_v5 = vpop.f32.mrb[0].mxu0 }
  0xee   : > { %v643_v6 = vpop.f32.mrb[1].mxu0  ;;  %v268_v7 = vsel %vm267_vm3, %v260_v5, -inf }
  0xef   : > { %269 = vmax.xlane.f32.xlu0 %v268_v7  ;;  %v263_v8 = vpop.f32.mrb[2].mxu0 }
  0xf0   : > { %v644_v9 = vpop.f32.mrb[3].mxu0 }
 0x17c   : > { %v270_v14 = vpop.xlane.xlu0 %269 }
 0x17d   : > { %v271_v15 = vmax.f32 %v266_v13, %v270_v14 }
 0x17f   : > { %v272_v16 = vsub.f32 %v266_v13, %v271_v15  ;;  %353 = vst.msk [vmem:[#allocation2] sm:$0xff] %vm210_vm2, %v271_v15  ;;  %277 = vperm.xlu0 %694, %v271_v15  }
 0x181   : > { %v273_v43 = vmul.f32 1.442695, %v272_v16 }
 0x1fe   : > { %v278_v19 = vpop.permute.xlu0 %277 }
 0x1ff   : > { %v280_v20 = vsub.f32 %v260_v5, %v278_v19 }
 0x201   : > { %v281_v21 = vmul.f32 1.442695, %v280_v20 }
 0x203   : > { %697 = vpow2.f32 %v281_v21 }
 0x204   : > { %699 = vpow2.f32 %v273_v43 }
 0x20d   : > { %v698_v23 = vpop.eup %697 }
 0x20e   : > { %v298_v25 = vpack.c.bf16 %v698_v23, %v698_v23  ;;  %v285_v42 = vsel %vm267_vm3, %v698_v23, 0.0  ;;  %v700_v44 = vpop.eup %699 }
 0x20f   : > { %v284_v54 = vmul.f32 %v700_v44, %v283_v53 }
 0x210   : > { %648 = vmatmul.mubr.msk.bf16.vlgmr.msra.gmra.mrb[0].mxu1 %vm267_vm3, %v298_v25 }
 0x211   : > { %652 = vmatpush3.bf16.xpose.msra.mxu1 %v365_v24  ;;  %653 = vmatprep.mubr.msk.bf16.mxu1 %vm734_vm0, %v733_v0 }
 0x218   : > { %654 = vmatmul.mubr.msk.bf16.vlgmr.msra.gmra.mrb[4].mxu1 %vm219_vm1, %v358_v26 }
 0x2e3   : > { %v345_v27 = vpop.f32.mrb[0].mxu1 }
 0x2e4   : > { %v649_v28 = vpop.f32.mrb[1].mxu1 }
 0x2e5   : > { %v348_v29 = vpop.f32.mrb[2].mxu1 }
 0x2e6   : > { %v650_v30 = vpop.f32.mrb[3].mxu1 }
 0x2eb   : > { %v401_v31 = vpop.f32.mrb[4].mxu1 }
 0x2ec   : > { %v655_v32 = vpop.f32.mrb[5].mxu1  ;;  %v409_v33 = vsel %vm267_vm3, %v401_v31, -inf }
 0x2ed   : > { %410 = vmax.xlane.f32.xlu1 %v409_v33  ;;  %v404_v34 = vpop.f32.mrb[6].mxu1 }
 0x2ee   : > { %v656_v35 = vpop.f32.mrb[7].mxu1 }
 0x2fe   : > { %440 = vrot.lane.b32.xlu1 %v624_v11, %s739_s22 }
 0x37a   : > { %v411_v37 = vpop.xlane.xlu1 %410 }
 0x37b   : > { %v412_v38 = vmax.f32 %v408_v36, %v411_v37 }
 0x37d   : > { %v413_v39 = vsub.f32 %v408_v36, %v412_v38  ;;  %495 = vst.msk [vmem:[#allocation2 + $0x8] sm:$0xff] %vm210_vm2, %v412_v38  ;;  %418 = vperm.xlu0 %694, %v412_v38  }
 0x37e   : > { %v441_v40 = vpop.permute.xlu1 %440 }
 0x37f   : > { %v446_v41 = vsel %vm307_vm4, %v441_v40, 0  ;;  %v414_v51 = vmul.f32 1.442695, %v413_v39 }
 0x380   : > { %658 = vmatpush3.bf16.msra.mxu0 %v446_v41 }
 0x39c   : > { %286 = vadd.xlane.f32.xlu0 %v285_v42 }
 0x3b2   : > { %294 = vperm.xlu0 %694, %v700_v44  }
 0x3fc   : > { %v419_v45 = vpop.permute.xlu0 %418 }
 0x3fd   : > { %v421_v46 = vsub.f32 %v401_v31, %v419_v45 }
 0x3ff   : > { %v422_v47 = vmul.f32 1.442695, %v421_v46 }
 0x401   : > { %701 = vpow2.f32 %v422_v47 }
 0x402   : > { %703 = vpow2.f32 %v414_v51 }
 0x40b   : > { %v702_v48 = vpop.eup %701 }
 0x40c   : > { %v427_v49 = vsel %vm267_vm3, %v702_v48, 0.0  ;;  %v439_v50 = vpack.c.bf16 %v702_v48, %v702_v48  ;;  %v704_v52 = vpop.eup %703 }
 0x40d   : > { %428 = vadd.xlane.f32.xlu1 %v427_v49  ;;  %v426_v62 = vmul.f32 %v704_v52, %v425_v61 }
 0x40e   : > { %660 = vmatmul.mubr.msk.bf16.vlgmr.msra.gmra.mrb[4].mxu0 %vm267_vm3, %v439_v50 }
 0x41e   : > { %435 = vperm.xlu1 %695, %v704_v52  }
 0x429   : > { %v287_v55 = vpop.xlane.xlu0 %286 }
 0x42a   : > { %v288_v56 = vadd.f32 %v287_v55, %v284_v54 }
 0x42c   : > { %290 = vst.msk [vmem:[#allocation3] sm:$0xff] %vm210_vm2, %v288_v56 }
 0x431   : > { %v295_v58 = vpop.permute.xlu0 %294 }
 0x432   : > { %v297_v59 = vmul.f32 %v295_v58, %v291_v57 }
 0x433   : > { %v500_v1 = vld [vmem:[#allocation3] sm:$0xff] }
 0x434   : > { %v351_v60 = vadd.f32 %v345_v27, %v297_v59  ;;  %705 = vrcp.f32 %v500_v1 }
 0x436   : > { %352 = vst.msk [vmem:[#allocation4] sm:$0xff] %vm219_vm1, %v351_v60 }
 0x43d   : > { %v432_v10 = vld [vmem:[#allocation4] sm:$0xff] }
 0x43e   : > { %v706_v7 = vpop.eup %705 }
 0x49a   : > { %v429_v63 = vpop.xlane.xlu1 %428 }
 0x49b   : > { %v430_v0 = vadd.f32 %v429_v63, %v426_v62 }
 0x49d   : > { %431 = vst.msk [vmem:[#allocation3 + $0x8] sm:$0xff] %vm210_vm2, %v430_v0 }
 0x49e   : > { %v436_v9 = vpop.permute.xlu1 %435 }
 0x49f   : > { %v438_v11 = vmul.f32 %v436_v9, %v432_v10 }
 0x4a4   : > { %v510_v2 = vld [vmem:[#allocation3 + $0x8] sm:$0xff] }
 0x4a5   : > { %707 = vrcp.f32 %v510_v2 }
 0x4af   : > { %v708_v8 = vpop.eup %707 }
 0x4e1   : > { %v482_v3 = vpop.f32.mrb[4].mxu0 }
 0x4e2   : > { %489 = vrot.lane.b32.xlu0 %v482_v3, %s739_s22  ;;  %v661_v4 = vpop.f32.mrb[5].mxu0 }
 0x4e3   : > { %v485_v5 = vpop.f32.mrb[6].mxu0 }
 0x4e4   : > { %v662_v6 = vpop.f32.mrb[7].mxu0 }
 0x4e6   : > { %504 = vperm.xlu0 %694, %v706_v7  }
 0x4ea   : > { %514 = vperm.xlu0 %694, %v708_v8  }
 0x554   : > { %v490_v12 = vpop.permute.xlu0 %489 }
 0x555   : > { %v492_v13 = vadd.f32 %v490_v12, %v438_v11 }
 0x557   : > { %494 = vst.msk [vmem:[#allocation4] sm:$0xff] %vm493_vm6, %v492_v13 }
 0x55e   : > { %v499_v14 = vld [vmem:[#allocation4] sm:$0xff] }
 0x565   : > { %v505_v15 = vpop.permute.xlu0 %504 }
 0x566   : > { %v507_v16 = vmul.f32 %v505_v15, %v499_v14 }
 0x568   : > { %508 = vst.msk [vmem:[#allocation4] sm:$0xff] %vm219_vm1, %v507_v16 }
 0x569   : > { %v515_v18 = vpop.permute.xlu0 %514 }
 0x56f   : > { %v509_v17 = vld [vmem:[#allocation4] sm:$0xff] }
 0x570   : > { %v517_v19 = vmul.f32 %v515_v18, %v509_v17 }
 0x572   : > { %518 = vst.msk [vmem:[#allocation4] sm:$0xff] %vm493_vm6, %v517_v19 }
 0x579   : > { %v519_v20 = vld [vmem:[#allocation4] sm:$0xff] }
 0x57a   : > { %v520_v21 = vpack.c.bf16 %v519_v20, %v519_v20 }
 0x57c   : > { %522 = vst.msk [vmem:[%s204_s25] sm:$0xf] %vm521_vm7, %v520_v21 }
 0x57d PF: > { %s12_s11 = sadd.s32 1, %s731_s11   ;;  %s838_s9 = smov %s727_s10 }
 0x57e   : > { %p9_p5 = scmp.ge.s32.totalorder %s12_s11, 4   ;;  %s839_s10 = smov %s841_s12 }
 0x580   :  { %11 = sbr.rel (!%p9_p5) target bundleno = 2 (0x2), region = 71 }

// kernel: transformer_controller_forward.31
= control target key start
LH: loop header
LB: loop body
LE: loop exit
PB: predicated region body
PF: predicated region fallthrough
CT: control target
= control target key end

     0   :  { %vm28_vm0 = vcmask 523264   ;;  %v246_v0 = vmov 0.0   ;;  %vm247_vm1 = vmmov 0   ;;  %vm194_vm2 = vcmask 519168   ;;  %s325_s1 = inlined_call_operand.vmem [shape: bf16[64,64], index: 1, kind: input, shape index: {}]   ;;  %s326_s0 = inlined_call_operand.vmem [shape: bf16[16,64], index: 0, kind: input, shape index: {}]   ;;  %s327_s3 = inlined_call_operand.vmem [shape: bf16[16,64], index: 3, kind: input, shape index: {}]   ;;  %s328_s2 = inlined_call_operand.vmem [shape: f32[1,64], index: 2, kind: input, shape index: {}]   ;;  %s329_s4 = inlined_call_operand.vmem [shape: f32[1,64], index: 4, kind: input, shape index: {}]   ;;  %s330_s5 = inlined_call_operand.vmem [shape: f32[1,64], index: 5, kind: input, shape index: {}]   ;;  %s331_s6 = inlined_call_operand.vmem [shape: bf16[16,64], index: 6, kind: output, shape index: {}]  }
   0x1   :  { %223 = vmatprep.subr.bf16.mxu0 %v246_v0  ;;  %v237_v1 = vld [vmem:[%s325_s1] sm:$0xff]   ;;  %231 = vmatprep.mubr.msk.bf16.mxu0 %vm247_vm1, %v246_v0  ;;  %29 = vst.msk [vmem:[#allocation2] sm:$0xff] %vm28_vm0, %v246_v0  ;;  %30 = vst.msk [vmem:[#allocation2 + $0x8] sm:$0xff] %vm28_vm0, %v246_v0  ;;  %v238_v2 = vld [vmem:[%s325_s1 + $0x8] sm:$0xff]  }
   0x2   :  { %224 = vmatpush3.bf16.msra.mxu0 %v237_v1  ;;  %v239_v3 = vld [vmem:[%s325_s1 + $0x10] sm:$0xff]   ;;  %v240_v4 = vld [vmem:[%s325_s1 + $0x18] sm:$0xff]   ;;  %v241_v5 = vld [vmem:[%s326_s0] sm:$0xff]  }
   0x3   :  { %225 = vmatprep.subr.bf16.mxu0 %v246_v0  ;;  %v215_v14 = vld [vmem:[%s327_s3] sm:$0xff]  }
   0x4   :  { %v207_v15 = vld [vmem:[%s328_s2] ss:$0 sm:$0xff]  ;;  %v216_v16 = vunpack.c.l.bf16 %v215_v14  ;;  %v217_v19 = vunpack.c.h.bf16 %v215_v14 }
   0x5   :  { %v208_v43 = vld [vmem:[%s329_s4] ss:$0 sm:$0xff] }
   0x6   :  { %226 = vmatpush3.bf16.msra.mxu0 %v238_v2  ;;  %v209_v45 = vld [vmem:[%s330_s5] ss:$0 sm:$0xff] }
   0x7   :  { %227 = vmatprep.subr.bf16.mxu0 %v246_v0 }
   0x8   :  { %v31_v6 = vld [vmem:[#allocation2] sm:$0xff]  ;;  %v32_v8 = vld [vmem:[#allocation2 + $0x8] sm:$0xff] }
   0xa   :  { %228 = vmatpush3.bf16.msra.mxu0 %v239_v3 }
   0xb   :  { %229 = vmatprep.subr.bf16.mxu0 %v246_v0 }
   0xe   :  { %230 = vmatpush3.bf16.msra.mxu0 %v240_v4 }
  0x11   :  { %232 = vmatmul.mubr.msk.bf16.vlgmr.msra.gmra.mrb[0].mxu0 %vm28_vm0, %v241_v5 }
  0xe4   :  { %v110_v7 = vpop.f32.mrb[0].mxu0 }
  0xe5   :  { %v117_v9 = vadd.f32 %v110_v7, %v31_v6  ;;  %v233_v10 = vpop.f32.mrb[1].mxu0 }
  0xe6   :  { %v113_v11 = vpop.f32.mrb[2].mxu0 }
  0xe7   :  { %119 = vst.msk [vmem:[#allocation2] sm:$0xff] %vm28_vm0, %v117_v9  ;;  %v118_v12 = vadd.f32 %v113_v11, %v32_v8  ;;  %v234_v13 = vpop.f32.mrb[3].mxu0 }
  0xe9   :  { %120 = vst.msk [vmem:[#allocation2 + $0x8] sm:$0xff] %vm28_vm0, %v118_v12 }
  0xee   :  { %v124_v17 = vld [vmem:[#allocation2] sm:$0xff] }
  0xef   :  { %v133_v18 = vadd.f32 %v207_v15, %v124_v17 }
  0xf0   :  { %v125_v20 = vld [vmem:[#allocation2 + $0x8] sm:$0xff] }
  0xf1   :  { %v139_v21 = vadd.f32 %v216_v16, %v133_v18  ;;  %v134_v22 = vadd.f32 %v207_v15, %v125_v20 }
  0xf3   :  { %v141_v23 = vsel %vm28_vm0, %v139_v21, 0.0  ;;  %v140_v24 = vadd.f32 %v217_v19, %v134_v22 }
  0xf4   :  { %142 = vadd.xlane.f32.xlu0 %v141_v23 }
  0xf5   :  { %v144_v25 = vsel %vm28_vm0, %v140_v24, 0.0 }
  0xf8   :  { %145 = vadd.xlane.f32.xlu0 %v144_v25 }
 0x181   :  { %v143_v26 = vpop.xlane.xlu0 %142 }
 0x182   :  { %v148_v27 = vmul.f32 0.015625, %v143_v26 }
 0x184   :  { %v150_v28 = vsub.f32 %v139_v21, %v148_v27 }
 0x185   :  { %v146_v29 = vpop.xlane.xlu0 %145 }
 0x186   :  { %v149_v30 = vmul.f32 0.015625, %v146_v29  ;;  %v152_v31 = vmul.f32 %v150_v28, %v150_v28 }
 0x188   :  { %v151_v32 = vsub.f32 %v140_v24, %v149_v30  ;;  %v154_v33 = vsel %vm28_vm0, %v152_v31, 0.0 }
 0x189   :  { %155 = vadd.xlane.f32.xlu1 %v154_v33 }
 0x18a   :  { %v153_v34 = vmul.f32 %v151_v32, %v151_v32 }
 0x18c   :  { %v157_v35 = vsel %vm28_vm0, %v153_v34, 0.0 }
 0x18d   :  { %158 = vadd.xlane.f32.xlu1 %v157_v35 }
 0x216   :  { %v156_v36 = vpop.xlane.xlu1 %155 }
 0x217   :  { %v160_v37 = vmul.f32 0.015625, %v156_v36 }
 0x219   :  { %v162_v38 = vadd.f32 1e-05, %v160_v37 }
 0x21a   :  { %v159_v39 = vpop.xlane.xlu1 %158 }
 0x21b   :  { %242 = vrsqrt.f32 %v162_v38  ;;  %v161_v40 = vmul.f32 0.015625, %v159_v39 }
 0x21d   :  { %v163_v41 = vadd.f32 1e-05, %v161_v40 }
 0x21f   :  { %244 = vrsqrt.f32 %v163_v41 }
 0x225   :  { %v243_v42 = vpop.eup %242 }
 0x226   :  { %v166_v44 = vmul.f32 %v243_v42, %v150_v28 }
 0x228   :  { %v175_v46 = vmul.f32 %v208_v43, %v166_v44 }
 0x229   :  { %v245_v47 = vpop.eup %244 }
 0x22a   :  { %v184_v48 = vadd.f32 %v209_v45, %v175_v46  ;;  %v167_v49 = vmul.f32 %v245_v47, %v151_v32 }
 0x22c   :  { %v212_v50 = vpack.c.bf16 %v184_v48, %v184_v48  ;;  %v176_v51 = vmul.f32 %v208_v43, %v167_v49 }
 0x22e   :  { %195 = vst.msk [vmem:[%s331_s6] sm:$0xf] %vm194_vm2, %v212_v50  ;;  %v185_v52 = vadd.f32 %v209_v45, %v176_v51 }
 0x230   :  { %v213_v53 = vpack.c.bf16 %v185_v52, %v185_v52 }
 0x232   :  { %196 = vst.msk [vmem:[%s331_s6 + $0x4] sm:$0xf] %vm194_vm2, %v213_v53 }

// kernel: transformer_controller_forward.49
= control target key start
LH: loop header
LB: loop body
LE: loop exit
PB: predicated region body
PF: predicated region fallthrough
CT: control target
= control target key end

     0   :  { %v179_v0 = vmov 0.0   ;;  %vm180_vm0 = vmmov 0   ;;  %vm62_vm1 = vcmask 523264   ;;  %s222_s1 = inlined_call_operand.vmem [shape: bf16[64,128], index: 1, kind: input, shape index: {}]   ;;  %s223_s0 = inlined_call_operand.vmem [shape: bf16[16,64], index: 0, kind: input, shape index: {}]   ;;  %s224_s2 = inlined_call_operand.vmem [shape: f32[1,128], index: 2, kind: input, shape index: {}]   ;;  %s225_s3 = inlined_call_operand.vmem [shape: bf16[16,128], index: 3, kind: output, shape index: {}]  }
   0x1   :  { %160 = vmatprep.subr.bf16.mxu0 %v179_v0  ;;  %v174_v1 = vld [vmem:[%s222_s1] sm:$0xff]   ;;  %168 = vmatprep.mubr.msk.bf16.mxu0 %vm180_vm0, %v179_v0  ;;  %v175_v2 = vld [vmem:[%s222_s1 + $0x8] sm:$0xff]   ;;  %v176_v3 = vld [vmem:[%s222_s1 + $0x10] sm:$0xff]  }
   0x2   :  { %161 = vmatpush3.bf16.msra.mxu0 %v174_v1  ;;  %v177_v4 = vld [vmem:[%s222_s1 + $0x18] sm:$0xff]   ;;  %v178_v5 = vld [vmem:[%s223_s0] sm:$0xff]  }
   0x3   :  { %162 = vmatprep.subr.bf16.mxu0 %v179_v0  ;;  %v145_v7 = vld [vmem:[%s224_s2] ss:$0 sm:$0xff] }
   0x6   :  { %163 = vmatpush3.bf16.msra.mxu0 %v175_v2 }
   0x7   :  { %164 = vmatprep.subr.bf16.mxu0 %v179_v0 }
   0xa   :  { %165 = vmatpush3.bf16.msra.mxu0 %v176_v3 }
   0xb   :  { %166 = vmatprep.subr.bf16.mxu0 %v179_v0 }
   0xe   :  { %167 = vmatpush3.bf16.msra.mxu0 %v177_v4 }
  0x11   :  { %169 = vmatmul.mubr.msk.bf16.vlgmr.msra.gmra.mrb[0].mxu0 %vm62_vm1, %v178_v5 }
  0xe4   :  { %v100_v6 = vpop.f32.mrb[0].mxu0 }
  0xe5   :  { %v170_v8 = vpop.f32.mrb[1].mxu0  ;;  %v123_v10 = vadd.f32 %v145_v7, %v100_v6 }
  0xe6   :  { %v103_v9 = vpop.f32.mrb[2].mxu0 }
  0xe7   :  { %v124_v11 = vadd.f32 %v145_v7, %v103_v9  ;;  %v171_v12 = vpop.f32.mrb[3].mxu0 }
  0xe9   :  { %v153_v13 = vpack.c.bf16 %v124_v11, %v123_v10 }
  0xeb   :  { %154 = vst [vmem:[%s225_s3] sm:$0xff] %v153_v13  }

// kernel: transformer_controller_forward.32
= control target key start
LH: loop header
LB: loop body
LE: loop exit
PB: predicated region body
PF: predicated region fallthrough
CT: control target
= control target key end

     0   :  { %vm28_vm0 = vcmask 523264   ;;  %v260_v0 = vmov 0.0   ;;  %vm261_vm1 = vmmov 0   ;;  %vm204_vm2 = vcmask 519168   ;;  %s339_s1 = inlined_call_operand.vmem [shape: bf16[64,64], index: 1, kind: input, shape index: {}]   ;;  %s340_s0 = inlined_call_operand.vmem [shape: bf16[16,64], index: 0, kind: input, shape index: {}, may-alias: {0,3}]   ;;  %s341_s2 = inlined_call_operand.vmem [shape: f32[1,64], index: 2, kind: input, shape index: {}]   ;;  %s342_s3 = inlined_call_operand.vmem [shape: bf16[16,64], index: 3, kind: input, shape index: {}, may-alias: {0,3}]   ;;  %s343_s4 = inlined_call_operand.vmem [shape: f32[1,64], index: 4, kind: input, shape index: {}]   ;;  %s344_s5 = inlined_call_operand.vmem [shape: f32[1,64], index: 5, kind: input, shape index: {}]   ;;  %s345_s6 = inlined_call_operand.vmem [shape: bf16[16,64], index: 6, kind: output, shape index: {}]  }
   0x1   :  { %233 = vmatprep.subr.bf16.mxu0 %v260_v0  ;;  %v247_v1 = vld [vmem:[%s339_s1] sm:$0xff]   ;;  %241 = vmatprep.mubr.msk.bf16.mxu0 %vm261_vm1, %v260_v0  ;;  %29 = vst.msk [vmem:[#allocation2] sm:$0xff] %vm28_vm0, %v260_v0  ;;  %30 = vst.msk [vmem:[#allocation2 + $0x8] sm:$0xff] %vm28_vm0, %v260_v0  ;;  %v248_v2 = vld [vmem:[%s339_s1 + $0x8] sm:$0xff]  }
   0x2   :  { %234 = vmatpush3.bf16.msra.mxu0 %v247_v1  ;;  %v249_v3 = vld [vmem:[%s339_s1 + $0x10] sm:$0xff]   ;;  %v250_v4 = vld [vmem:[%s339_s1 + $0x18] sm:$0xff]   ;;  %v251_v5 = vld [vmem:[%s340_s0] sm:$0xff]  }
   0x3   :  { %235 = vmatprep.subr.bf16.mxu0 %v260_v0  ;;  %v217_v14 = vld [vmem:[%s341_s2] ss:$0 sm:$0xff] }
   0x4   :  { %v225_v21 = vld [vmem:[%s342_s3] sm:$0xff]  }
   0x5   :  { %v226_v25 = vunpack.c.l.bf16 %v225_v21  ;;  %v227_v30 = vunpack.c.h.bf16 %v225_v21  ;;  %v218_v53 = vld [vmem:[%s343_s4] ss:$0 sm:$0xff] }
   0x6   :  { %236 = vmatpush3.bf16.msra.mxu0 %v248_v2  ;;  %v219_v55 = vld [vmem:[%s344_s5] ss:$0 sm:$0xff] }
   0x7   :  { %237 = vmatprep.subr.bf16.mxu0 %v260_v0 }
   0x8   :  { %v31_v6 = vld [vmem:[#allocation2] sm:$0xff]  ;;  %v32_v8 = vld [vmem:[#allocation2 + $0x8] sm:$0xff] }
   0xa   :  { %238 = vmatpush3.bf16.msra.mxu0 %v249_v3 }
   0xb   :  { %239 = vmatprep.subr.bf16.mxu0 %v260_v0 }
   0xe   :  { %240 = vmatpush3.bf16.msra.mxu0 %v250_v4 }
  0x11   :  { %242 = vmatmul.mubr.msk.bf16.vlgmr.msra.gmra.mrb[0].mxu0 %vm28_vm0, %v251_v5 }
  0xe4   :  { %v110_v7 = vpop.f32.mrb[0].mxu0 }
  0xe5   :  { %v117_v9 = vadd.f32 %v110_v7, %v31_v6  ;;  %v243_v10 = vpop.f32.mrb[1].mxu0 }
  0xe6   :  { %v113_v11 = vpop.f32.mrb[2].mxu0 }
  0xe7   :  { %119 = vst.msk [vmem:[#allocation2] sm:$0xff] %vm28_vm0, %v117_v9  ;;  %v118_v12 = vadd.f32 %v113_v11, %v32_v8  ;;  %v244_v13 = vpop.f32.mrb[3].mxu0 }
  0xe9   :  { %120 = vst.msk [vmem:[#allocation2 + $0x8] sm:$0xff] %vm28_vm0, %v118_v12 }
  0xee   :  { %v124_v15 = vld [vmem:[#allocation2] sm:$0xff] }
  0xef   :  { %v133_v16 = vadd.f32 %v217_v14, %v124_v15 }
  0xf0   :  { %v125_v17 = vld [vmem:[#allocation2 + $0x8] sm:$0xff] }
  0xf1   :  { %v137_v18 = vmul.f32 0.70710677, %v133_v16  ;;  %v134_v19 = vadd.f32 %v217_v14, %v125_v17  ;;  %v135_v23 = vmul.f32 0.5, %v133_v16 }
  0xf3   :  { %252 = verf.f32 %v137_v18  ;;  %v138_v20 = vmul.f32 0.70710677, %v134_v19  ;;  %v136_v28 = vmul.f32 0.5, %v134_v19 }
  0xf5   :  { %254 = verf.f32 %v138_v20 }
  0xfd   :  { %v253_v22 = vpop.eup %252 }
  0xfe   :  { %v141_v24 = vadd.f32 1.0, %v253_v22 }
  0xff   :  { %v255_v26 = vpop.eup %254 }
 0x100   :  { %v143_v27 = vmul.f32 %v141_v24, %v135_v23  ;;  %v142_v29 = vadd.f32 1.0, %v255_v26 }
 0x102   :  { %v149_v31 = vadd.f32 %v226_v25, %v143_v27  ;;  %v144_v32 = vmul.f32 %v142_v29, %v136_v28 }
 0x104   :  { %v151_v33 = vsel %vm28_vm0, %v149_v31, 0.0  ;;  %v150_v34 = vadd.f32 %v227_v30, %v144_v32 }
 0x105   :  { %152 = vadd.xlane.f32.xlu0 %v151_v33 }
 0x106   :  { %v154_v35 = vsel %vm28_vm0, %v150_v34, 0.0 }
 0x109   :  { %155 = vadd.xlane.f32.xlu0 %v154_v35 }
 0x192   :  { %v153_v36 = vpop.xlane.xlu0 %152 }
 0x193   :  { %v158_v37 = vmul.f32 0.015625, %v153_v36 }
 0x195   :  { %v160_v38 = vsub.f32 %v149_v31, %v158_v37 }
 0x196   :  { %v156_v39 = vpop.xlane.xlu0 %155 }
 0x197   :  { %v159_v40 = vmul.f32 0.015625, %v156_v39  ;;  %v162_v41 = vmul.f32 %v160_v38, %v160_v38 }
 0x199   :  { %v161_v42 = vsub.f32 %v150_v34, %v159_v40  ;;  %v164_v43 = vsel %vm28_vm0, %v162_v41, 0.0 }
 0x19a   :  { %165 = vadd.xlane.f32.xlu1 %v164_v43 }
 0x19b   :  { %v163_v44 = vmul.f32 %v161_v42, %v161_v42 }
 0x19d   :  { %v167_v45 = vsel %vm28_vm0, %v163_v44, 0.0 }
 0x19e   :  { %168 = vadd.xlane.f32.xlu1 %v167_v45 }
 0x227   :  { %v166_v46 = vpop.xlane.xlu1 %165 }
 0x228   :  { %v170_v47 = vmul.f32 0.015625, %v166_v46 }
 0x22a   :  { %v172_v48 = vadd.f32 1e-05, %v170_v47 }
 0x22b   :  { %v169_v49 = vpop.xlane.xlu1 %168 }
 0x22c   :  { %256 = vrsqrt.f32 %v172_v48  ;;  %v171_v50 = vmul.f32 0.015625, %v169_v49 }
 0x22e   :  { %v173_v51 = vadd.f32 1e-05, %v171_v50 }
 0x230   :  { %258 = vrsqrt.f32 %v173_v51 }
 0x236   :  { %v257_v52 = vpop.eup %256 }
 0x237   :  { %v176_v54 = vmul.f32 %v257_v52, %v160_v38 }
 0x239   :  { %v185_v56 = vmul.f32 %v218_v53, %v176_v54 }
 0x23a   :  { %v259_v57 = vpop.eup %258 }
 0x23b   :  { %v194_v58 = vadd.f32 %v219_v55, %v185_v56  ;;  %v177_v59 = vmul.f32 %v259_v57, %v161_v42 }
 0x23d   :  { %v222_v60 = vpack.c.bf16 %v194_v58, %v194_v58  ;;  %v186_v61 = vmul.f32 %v218_v53, %v177_v59 }
 0x23f   :  { %205 = vst.msk [vmem:[%s345_s6] sm:$0xf] %vm204_vm2, %v222_v60  ;;  %v195_v62 = vadd.f32 %v219_v55, %v186_v61 }
 0x241   :  { %v223_v63 = vpack.c.bf16 %v195_v62, %v195_v62 }
 0x243   :  { %206 = vst.msk [vmem:[%s345_s6 + $0x4] sm:$0xf] %vm204_vm2, %v223_v63 }

// kernel: transformer_controller_forward.40
= control target key start
LH: loop header
LB: loop body
LE: loop exit
PB: predicated region body
PF: predicated region fallthrough
CT: control target
= control target key end

     0   :  { %vm19_vm0 = vcmask 523264   ;;  %v176_v0 = vmov 0.0   ;;  %vm177_vm1 = vmmov 0   ;;  %vm134_vm2 = vcmask 519168   ;;  %s227_s1 = inlined_call_operand.vmem [shape: bf16[64,64], index: 1, kind: input, shape index: {}]   ;;  %s228_s0 = inlined_call_operand.vmem [shape: bf16[16,64], index: 0, kind: input, shape index: {}]   ;;  %s229_s2 = inlined_call_operand.vmem [shape: f32[1,64], index: 2, kind: input, shape index: {}]   ;;  %s230_s3 = inlined_call_operand.vmem [shape: bf16[16,64], index: 3, kind: output, shape index: {}]  }
   0x1   :  { %157 = vmatprep.subr.bf16.mxu0 %v176_v0  ;;  %v171_v1 = vld [vmem:[%s227_s1] sm:$0xff]   ;;  %165 = vmatprep.mubr.msk.bf16.mxu0 %vm177_vm1, %v176_v0  ;;  %20 = vst.msk [vmem:[#allocation2] sm:$0xff] %vm19_vm0, %v176_v0  ;;  %21 = vst.msk [vmem:[#allocation2 + $0x8] sm:$0xff] %vm19_vm0, %v176_v0  ;;  %v172_v2 = vld [vmem:[%s227_s1 + $0x8] sm:$0xff]  }
   0x2   :  { %158 = vmatpush3.bf16.msra.mxu0 %v171_v1  ;;  %v173_v3 = vld [vmem:[%s227_s1 + $0x10] sm:$0xff]   ;;  %v174_v4 = vld [vmem:[%s227_s1 + $0x18] sm:$0xff]   ;;  %v175_v5 = vld [vmem:[%s228_s0] sm:$0xff]  }
   0x3   :  { %159 = vmatprep.subr.bf16.mxu0 %v176_v0  ;;  %v147_v14 = vld [vmem:[%s229_s2] ss:$0 sm:$0xff] }
   0x6   :  { %160 = vmatpush3.bf16.msra.mxu0 %v172_v2 }
   0x7   :  { %161 = vmatprep.subr.bf16.mxu0 %v176_v0 }
   0x8   :  { %v22_v6 = vld [vmem:[#allocation2] sm:$0xff]  ;;  %v23_v8 = vld [vmem:[#allocation2 + $0x8] sm:$0xff] }
   0xa   :  { %162 = vmatpush3.bf16.msra.mxu0 %v173_v3 }
   0xb   :  { %163 = vmatprep.subr.bf16.mxu0 %v176_v0 }
   0xe   :  { %164 = vmatpush3.bf16.msra.mxu0 %v174_v4 }
  0x11   :  { %166 = vmatmul.mubr.msk.bf16.vlgmr.msra.gmra.mrb[0].mxu0 %vm19_vm0, %v175_v5 }
  0xe4   :  { %v101_v7 = vpop.f32.mrb[0].mxu0 }
  0xe5   :  { %v108_v9 = vadd.f32 %v101_v7, %v22_v6  ;;  %v167_v10 = vpop.f32.mrb[1].mxu0 }
  0xe6   :  { %v104_v11 = vpop.f32.mrb[2].mxu0 }
  0xe7   :  { %110 = vst.msk [vmem:[#allocation2] sm:$0xff] %vm19_vm0, %v108_v9  ;;  %v109_v12 = vadd.f32 %v104_v11, %v23_v8  ;;  %v168_v13 = vpop.f32.mrb[3].mxu0 }
  0xe9   :  { %111 = vst.msk [vmem:[#allocation2 + $0x8] sm:$0xff] %vm19_vm0, %v109_v12 }
  0xee   :  { %v115_v15 = vld [vmem:[#allocation2] sm:$0xff] }
  0xef   :  { %v124_v16 = vadd.f32 %v147_v14, %v115_v15 }
  0xf0   :  { %v116_v17 = vld [vmem:[#allocation2 + $0x8] sm:$0xff] }
  0xf1   :  { %v150_v18 = vpack.c.bf16 %v124_v16, %v124_v16  ;;  %v125_v19 = vadd.f32 %v147_v14, %v116_v17 }
  0xf3   :  { %135 = vst.msk [vmem:[%s230_s3] sm:$0xf] %vm134_vm2, %v150_v18  ;;  %v151_v20 = vpack.c.bf16 %v125_v19, %v125_v19 }
  0xf5   :  { %136 = vst.msk [vmem:[%s230_s3 + $0x4] sm:$0xf] %vm134_vm2, %v151_v20 }

// kernel: transformer_controller_forward.53
= control target key start
LH: loop header
LB: loop body
LE: loop exit
PB: predicated region body
PF: predicated region fallthrough
CT: control target
= control target key end

     0   :  { %vm19_vm0 = vcmask 261120   ;;  %v177_v0 = vmov 0.0   ;;  %vm178_vm1 = vmmov 0   ;;  %vm63_vm2 = vcmask 523264   ;;  %s227_s1 = inlined_call_operand.vmem [shape: bf16[64,32], index: 1, kind: input, shape index: {}]   ;;  %s228_s0 = inlined_call_operand.vmem [shape: bf16[16,64], index: 0, kind: input, shape index: {}]   ;;  %s229_s2 = inlined_call_operand.vmem [shape: f32[1,32], index: 2, kind: input, shape index: {}]   ;;  %s230_s3 = inlined_call_operand.vmem [shape: bf16[16,32], index: 3, kind: output, shape index: {}]  }
   0x1   :  { %158 = vmatprep.subr.bf16.mxu0 %v177_v0  ;;  %v172_v1 = vld [vmem:[%s227_s1] sm:$0xff]   ;;  %166 = vmatprep.mubr.msk.bf16.mxu0 %vm178_vm1, %v177_v0  ;;  %20 = vst.msk [vmem:[#allocation2] sm:$0xff] %vm19_vm0, %v177_v0  ;;  %21 = vst.msk [vmem:[#allocation2 + $0x8] sm:$0xff] %vm19_vm0, %v177_v0  ;;  %v173_v2 = vld [vmem:[%s227_s1 + $0x8] sm:$0xff]   ;;  %vm135_vm3 = vcmask 257024  }
   0x2   :  { %159 = vmatpush3.bf16.msra.mxu0 %v172_v1  ;;  %v174_v3 = vld [vmem:[%s227_s1 + $0x10] sm:$0xff]   ;;  %v175_v4 = vld [vmem:[%s227_s1 + $0x18] sm:$0xff]   ;;  %v176_v5 = vld [vmem:[%s228_s0] sm:$0xff]  }
   0x3   :  { %160 = vmatprep.subr.bf16.mxu0 %v177_v0  ;;  %v148_v14 = vld [vmem:[%s229_s2] ss:$0 sm:$0xff] }
   0x6   :  { %161 = vmatpush3.bf16.msra.mxu0 %v173_v2 }
   0x7   :  { %162 = vmatprep.subr.bf16.mxu0 %v177_v0 }
   0x8   :  { %v22_v6 = vld [vmem:[#allocation2] sm:$0xff]  ;;  %v23_v8 = vld [vmem:[#allocation2 + $0x8] sm:$0xff] }
   0xa   :  { %163 = vmatpush3.bf16.msra.mxu0 %v174_v3 }
   0xb   :  { %164 = vmatprep.subr.bf16.mxu0 %v177_v0 }
   0xe   :  { %165 = vmatpush3.bf16.msra.mxu0 %v175_v4 }
  0x11   :  { %167 = vmatmul.mubr.msk.bf16.vlgmr.msra.gmra.mrb[0].mxu0 %vm63_vm2, %v176_v5 }
  0xe4   :  { %v101_v7 = vpop.f32.mrb[0].mxu0 }
  0xe5   :  { %v108_v9 = vadd.f32 %v101_v7, %v22_v6  ;;  %v168_v10 = vpop.f32.mrb[1].mxu0 }
  0xe6   :  { %v104_v11 = vpop.f32.mrb[2].mxu0 }
  0xe7   :  { %111 = vst.msk [vmem:[#allocation2] sm:$0xff] %vm19_vm0, %v108_v9  ;;  %v109_v12 = vadd.f32 %v104_v11, %v23_v8  ;;  %v169_v13 = vpop.f32.mrb[3].mxu0 }
  0xe9   :  { %112 = vst.msk [vmem:[#allocation2 + $0x8] sm:$0xff] %vm19_vm0, %v109_v12 }
  0xee   :  { %v116_v15 = vld [vmem:[#allocation2] sm:$0xff] }
  0xef   :  { %v125_v16 = vadd.f32 %v148_v14, %v116_v15 }
  0xf0   :  { %v117_v17 = vld [vmem:[#allocation2 + $0x8] sm:$0xff] }
  0xf1   :  { %v151_v18 = vpack.c.bf16 %v125_v16, %v125_v16  ;;  %v126_v19 = vadd.f32 %v148_v14, %v117_v17 }
  0xf3   :  { %136 = vst.msk [vmem:[%s230_s3] sm:$0xf] %vm135_vm3, %v151_v18  ;;  %v152_v20 = vpack.c.bf16 %v126_v19, %v126_v19 }
  0xf5   :  { %137 = vst.msk [vmem:[%s230_s3 + $0x4] sm:$0xf] %vm135_vm3, %v152_v20 }

// kernel: transformer_controller_forward.38
= control target key start
LH: loop header
LB: loop body
LE: loop exit
PB: predicated region body
PF: predicated region fallthrough
CT: control target
= control target key end

     0   :  { %s839_s12 = smov 0   ;;  %s841_s13 = smov 0   ;;  %s922_s0 = inlined_call_operand.vmem [shape: bf16[2,8,64], index: 0, kind: input, shape index: {}]   ;;  %s923_s1 = inlined_call_operand.vmem [shape: bf16[2,8,128], index: 1, kind: input, shape index: {}]   ;;  %s924_s2 = inlined_call_operand.vmem [shape: bf16[1,8,8], index: 2, kind: input, shape index: {}]   ;;  %s925_s3 = inlined_call_operand.vmem [shape: bf16[2,8,64], index: 3, kind: output, shape index: {}]  }
   0x1   :  { %s843_s14 = smov 0  }
   0x2 LB: > { %s32_s15 = sadd.s32 1, %s806_s13  ;;  %p698_p0 = scmp.ge.s32.totalorder %s810_s14, 1  ;;  %s810_s14 = sphi %s843_s14, %s13_s14   ;;  %s806_s13 = sphi %s841_s13, %s927_s13   ;;  %s802_s12 = sphi %s839_s12, %s926_s12  }
   0x3   : > { %p34_p1 = scmp.ge.s32.totalorder %s32_s15, 2  ;;  %p190_p2 = scmp.lt.s32.totalorder %s810_s14, 3 }
   0x5   : > { %s929_s15 = smov (%p34_p1, %s32_s15), 0  ;;  %p191_p3 = pnand %p698_p0, %p190_p2 }
   0x6   : > { %p232_p4 = scmp.lt.s32.totalorder (!%p191_p3), %s802_s12, 1  ;;  %v812_v0 = vmov (!%p191_p3), 0.0   ;;  %vm813_vm0 = vmmov (!%p191_p3), 0   ;;  %vm276_vm1 = vcmask (!%p191_p3), 261120   ;;  %vm265_vm2 = vcmask (!%p191_p3), 7168   ;;  %s816_s25 = smov (!%p191_p3), 64  }
   0x7   : > { %194 = sbr.rel (%p191_p3) target bundleno = 1409 (0x581), region = 32  ;;  %718 = vmatprep.subr.bf16.mxu0 (!%p191_p3), %v812_v0  ;;  %720 = vmatprep.mubr.msk.bf16.mxu0 (!%p191_p3), %vm813_vm0, %v812_v0  ;;  %v814_v4 = vmov (!%p191_p3), -1e+30   ;;  %268 = vst.msk [vmem:[#allocation3] sm:$0xff] (!%p191_p3), %vm265_vm2, %v812_v0  ;;  %269 = vst.msk [vmem:[#allocation3 + $0x8] sm:$0xff] (!%p191_p3), %vm265_vm2, %v812_v0  ;;  %vm325_vm3 = vcmask (!%p191_p3), 64512  }
   0x8   : > { %724 = vmatprep.subr.bf16.mxu1 (!%p191_p3), %v812_v0  ;;  %726 = vmatprep.mubr.msk.bf16.mxu1 (!%p191_p3), %vm813_vm0, %v812_v0  ;;  %266 = vst.msk [vmem:[#allocation2] sm:$0xff] (!%p191_p3), %vm265_vm2, %v814_v4  ;;  %267 = vst.msk [vmem:[#allocation2 + $0x8] sm:$0xff] (!%p191_p3), %vm265_vm2, %v814_v4  ;;  %v274_v5 = vld [vmem:[%s924_s2] sm:$0xf] (!%p191_p3)  ;;  %v815_v13 = vmov (!%p191_p3), 0   ;;  %s817_s26 = smov (!%p191_p3), 96  }
   0x9   : > { %v275_v6 = vunpack.c.l.bf16 (!%p191_p3), %v274_v5  ;;  %773 = vset.pattern.permute.xlu0 (!%p191_p3), %v815_v13  ;;  %774 = vset.pattern.permute.xlu1 (!%p191_p3), %v815_v13  ;;  %vm365_vm4 = vcmask (!%p191_p3), 1043456   ;;  %s818_s27 = smov (!%p191_p3), 32   ;;  %vm270_vm5 = vcmask (!%p191_p3), 523264   ;;  %vm552_vm6 = vcmask (!%p191_p3), 523520  }
   0xa   : > { %271 = vst.msk [vmem:[#allocation4] sm:$0xff] (!%p191_p3), %vm270_vm5, %v812_v0  ;;  %vm580_vm7 = vcmask (!%p191_p3), 519168  }
   0xe   : > { %s931_s12 = smov (!%p232_p4, %s802_s12), 1  ;;  %v341_v57 = vld [vmem:[#allocation3] sm:$0xff] }
   0xf   : > { %s863_s16 = sshll.u32 %s931_s12, 2  ;;  %v324_v16 = vld [vmem:[#allocation2] sm:$0xff]  ;;  %v467_v40 = vld [vmem:[#allocation2 + $0x8] sm:$0xff] }
  0x10   : > { %s245_s19 = scalar_lea.vmem %s923_s1, %s863_s16  ;;  %s238_s22 = scalar_lea.vmem %s922_s0, %s863_s16 }
  0x11   : > { %v273_v1 = vld [vmem:[%s245_s19] sm:$0xf]  ;;  %s259_s30 = scalar_lea.vmem %s925_s3, %s863_s16 }
  0x12   : > { %v281_v2 = vsel %vm276_vm1, %v273_v1, 0  ;;  %v272_v3 = vld [vmem:[%s238_s22] sm:$0xf]  ;;  %v703_v14 = vcombine.low %v273_v1, %v273_v1  ;;  %v484_v1 = vld [vmem:[#allocation3 + $0x8] sm:$0xff] }
  0x13   : > { %719 = vmatpush3.bf16.xpose.msra.mxu0 %v281_v2  ;;  %v705_v15 = vcombine.low %v272_v3, %v272_v3  ;;  %v349_v61 = vld [vmem:[#allocation4] sm:$0xff] }
  0x14   : > { %736 = vmatprep.subr.bf16.mxu0 %v812_v0  ;;  %360 = vrot.lane.b32.xlu1 %v703_v14, %s816_s25 }
  0x18   : > { %417 = vrot.lane.b32.xlu1 %v703_v14, %s817_s26 }
  0x1a   : > { %721 = vmatmul.mubr.msk.bf16.vlgmr.msra.gmra.mrb[0].mxu0 %vm276_vm1, %v272_v3 }
  0x1b   : > { %738 = vmatprep.mubr.msk.bf16.mxu0 %vm813_vm0, %v812_v0 }
  0x1c   : > { %415 = vrot.lane.b32.xlu1 %v705_v15, %s817_s26 }
  0x86   : > { %v361_v20 = vpop.permute.xlu1 %360 }
  0x87   : > { %v367_v21 = vsel %vm365_vm4, %v361_v20, 0 }
  0x88   : > { %725 = vmatpush3.bf16.msra.mxu1 %v367_v21 }
  0x89   : > { %730 = vmatprep.subr.bf16.mxu1 %v812_v0 }
  0x8a   : > { %v418_v25 = vpop.permute.xlu1 %417 }
  0x8b   : > { %v423_v27 = vsel %vm276_vm1, %v418_v25, 0 }
  0x8e   : > { %v416_v29 = vpop.permute.xlu1 %415 }
  0xed   : > { %v317_v7 = vpop.f32.mrb[0].mxu0 }
  0xee   : > { %v323_v8 = vmul.f32 %v317_v7, %v275_v6  ;;  %v722_v9 = vpop.f32.mrb[1].mxu0 }
  0xef   : > { %v320_v10 = vpop.f32.mrb[2].mxu0 }
  0xf0   : > { %v723_v11 = vpop.f32.mrb[3].mxu0  ;;  %v326_v12 = vsel %vm325_vm3, %v323_v8, -inf }
  0xf1   : > { %327 = vmax.xlane.f32.xlu0 %v326_v12 }
 0x17e   : > { %v328_v17 = vpop.xlane.xlu0 %327 }
 0x17f   : > { %v329_v18 = vmax.f32 %v324_v16, %v328_v17 }
 0x181   : > { %v330_v19 = vsub.f32 %v324_v16, %v329_v18  ;;  %411 = vst.msk [vmem:[#allocation2] sm:$0xff] %vm265_vm2, %v329_v18  ;;  %335 = vperm.xlu0 %773, %v329_v18  }
 0x183   : > { %v331_v47 = vmul.f32 1.442695, %v330_v19 }
 0x200   : > { %v336_v22 = vpop.permute.xlu0 %335 }
 0x201   : > { %v338_v23 = vsub.f32 %v323_v8, %v336_v22 }
 0x203   : > { %v339_v24 = vmul.f32 1.442695, %v338_v23 }
 0x205   : > { %776 = vpow2.f32 %v339_v24 }
 0x206   : > { %778 = vpow2.f32 %v331_v47 }
 0x20f   : > { %v777_v26 = vpop.eup %776 }
 0x210   : > { %v356_v28 = vpack.c.bf16 %v777_v26, %v777_v26  ;;  %v343_v46 = vsel %vm325_vm3, %v777_v26, 0.0  ;;  %v779_v48 = vpop.eup %778 }
 0x211   : > { %v342_v58 = vmul.f32 %v779_v48, %v341_v57 }
 0x212   : > { %727 = vmatmul.mubr.msk.bf16.vlgmr.msra.gmra.mrb[0].mxu1 %vm325_vm3, %v356_v28 }
 0x213   : > { %731 = vmatpush3.bf16.xpose.msra.mxu1 %v423_v27  ;;  %732 = vmatprep.mubr.msk.bf16.mxu1 %vm813_vm0, %v812_v0 }
 0x21a   : > { %733 = vmatmul.mubr.msk.bf16.vlgmr.msra.gmra.mrb[4].mxu1 %vm276_vm1, %v416_v29 }
 0x2e5   : > { %v403_v30 = vpop.f32.mrb[0].mxu1 }
 0x2e6   : > { %v728_v31 = vpop.f32.mrb[1].mxu1 }
 0x2e7   : > { %v406_v32 = vpop.f32.mrb[2].mxu1 }
 0x2e8   : > { %v729_v33 = vpop.f32.mrb[3].mxu1 }
 0x2ed   : > { %v459_v34 = vpop.f32.mrb[4].mxu1 }
 0x2ee   : > { %v465_v35 = vmul.f32 %v459_v34, %v275_v6  ;;  %v734_v36 = vpop.f32.mrb[5].mxu1 }
 0x2ef   : > { %v462_v37 = vpop.f32.mrb[6].mxu1 }
 0x2f0   : > { %v735_v38 = vpop.f32.mrb[7].mxu1  ;;  %v468_v39 = vsel %vm325_vm3, %v465_v35, -inf }
 0x2f1   : > { %469 = vmax.xlane.f32.xlu1 %v468_v39 }
 0x302   : > { %499 = vrot.lane.b32.xlu1 %v703_v14, %s818_s27 }
 0x37e   : > { %v470_v41 = vpop.xlane.xlu1 %469 }
 0x37f   : > { %v471_v42 = vmax.f32 %v467_v40, %v470_v41 }
 0x381   : > { %v472_v43 = vsub.f32 %v467_v40, %v471_v42  ;;  %554 = vst.msk [vmem:[#allocation2 + $0x8] sm:$0xff] %vm265_vm2, %v471_v42  ;;  %477 = vperm.xlu0 %773, %v471_v42  }
 0x382   : > { %v500_v44 = vpop.permute.xlu1 %499 }
 0x383   : > { %v505_v45 = vsel %vm365_vm4, %v500_v44, 0  ;;  %v473_v55 = vmul.f32 1.442695, %v472_v43 }
 0x384   : > { %737 = vmatpush3.bf16.msra.mxu0 %v505_v45 }
 0x3a0   : > { %344 = vadd.xlane.f32.xlu0 %v343_v46 }
 0x3b6   : > { %352 = vperm.xlu0 %773, %v779_v48  }
 0x400   : > { %v478_v49 = vpop.permute.xlu0 %477 }
 0x401   : > { %v480_v50 = vsub.f32 %v465_v35, %v478_v49 }
 0x403   : > { %v481_v51 = vmul.f32 1.442695, %v480_v50 }
 0x405   : > { %780 = vpow2.f32 %v481_v51 }
 0x406   : > { %782 = vpow2.f32 %v473_v55 }
 0x40f   : > { %v781_v52 = vpop.eup %780 }
 0x410   : > { %v486_v53 = vsel %vm325_vm3, %v781_v52, 0.0  ;;  %v498_v54 = vpack.c.bf16 %v781_v52, %v781_v52  ;;  %v783_v56 = vpop.eup %782 }
 0x411   : > { %487 = vadd.xlane.f32.xlu1 %v486_v53  ;;  %v485_v2 = vmul.f32 %v783_v56, %v484_v1 }
 0x412   : > { %739 = vmatmul.mubr.msk.bf16.vlgmr.msra.gmra.mrb[4].mxu0 %vm325_vm3, %v498_v54 }
 0x422   : > { %494 = vperm.xlu1 %774, %v783_v56  }
 0x42d   : > { %v345_v59 = vpop.xlane.xlu0 %344 }
 0x42e   : > { %v346_v60 = vadd.f32 %v345_v59, %v342_v58 }
 0x430   : > { %348 = vst.msk [vmem:[#allocation3] sm:$0xff] %vm265_vm2, %v346_v60 }
 0x435   : > { %v353_v62 = vpop.permute.xlu0 %352 }
 0x436   : > { %v355_v63 = vmul.f32 %v353_v62, %v349_v61 }
 0x437   : > { %v559_v5 = vld [vmem:[#allocation3] sm:$0xff] }
 0x438   : > { %v409_v0 = vadd.f32 %v403_v30, %v355_v63  ;;  %784 = vrcp.f32 %v559_v5 }
 0x43a   : > { %410 = vst.msk [vmem:[#allocation4] sm:$0xff] %vm276_vm1, %v409_v0 }
 0x441   : > { %v491_v14 = vld [vmem:[#allocation4] sm:$0xff] }
 0x442   : > { %v785_v11 = vpop.eup %784 }
 0x49e   : > { %v488_v3 = vpop.xlane.xlu1 %487 }
 0x49f   : > { %v489_v4 = vadd.f32 %v488_v3, %v485_v2 }
 0x4a1   : > { %490 = vst.msk [vmem:[#allocation3 + $0x8] sm:$0xff] %vm265_vm2, %v489_v4 }
 0x4a2   : > { %v495_v13 = vpop.permute.xlu1 %494 }
 0x4a3   : > { %v497_v15 = vmul.f32 %v495_v13, %v491_v14 }
 0x4a8   : > { %v569_v6 = vld [vmem:[#allocation3 + $0x8] sm:$0xff] }
 0x4a9   : > { %786 = vrcp.f32 %v569_v6 }
 0x4b3   : > { %v787_v12 = vpop.eup %786 }
 0x4e5   : > { %v541_v7 = vpop.f32.mrb[4].mxu0 }
 0x4e6   : > { %548 = vrot.lane.b32.xlu0 %v541_v7, %s818_s27  ;;  %v740_v8 = vpop.f32.mrb[5].mxu0 }
 0x4e7   : > { %v544_v9 = vpop.f32.mrb[6].mxu0 }
 0x4e8   : > { %v741_v10 = vpop.f32.mrb[7].mxu0 }
 0x4ea   : > { %563 = vperm.xlu0 %773, %v785_v11  }
 0x4ee   : > { %573 = vperm.xlu0 %773, %v787_v12  }
 0x558   : > { %v549_v16 = vpop.permute.xlu0 %548 }
 0x559   : > { %v551_v17 = vadd.f32 %v549_v16, %v497_v15 }
 0x55b   : > { %553 = vst.msk [vmem:[#allocation4] sm:$0xff] %vm552_vm6, %v551_v17 }
 0x562   : > { %v558_v18 = vld [vmem:[#allocation4] sm:$0xff] }
 0x569   : > { %v564_v19 = vpop.permute.xlu0 %563 }
 0x56a   : > { %v566_v20 = vmul.f32 %v564_v19, %v558_v18 }
 0x56c   : > { %567 = vst.msk [vmem:[#allocation4] sm:$0xff] %vm276_vm1, %v566_v20 }
 0x56d   : > { %v574_v22 = vpop.permute.xlu0 %573 }
 0x573   : > { %v568_v21 = vld [vmem:[#allocation4] sm:$0xff] }
 0x574   : > { %v576_v23 = vmul.f32 %v574_v22, %v568_v21 }
 0x576   : > { %577 = vst.msk [vmem:[#allocation4] sm:$0xff] %vm552_vm6, %v576_v23 }
 0x57d   : > { %v578_v24 = vld [vmem:[#allocation4] sm:$0xff] }
 0x57e   : > { %v579_v25 = vpack.c.bf16 %v578_v24, %v578_v24 }
 0x580   : > { %581 = vst.msk [vmem:[%s259_s30] sm:$0xf] %vm580_vm7, %v579_v25 }
 0x581 PF: > { %s13_s14 = sadd.s32 1, %s810_s14   ;;  %s926_s12 = smov %s806_s13 }
 0x582   : > { %p10_p5 = scmp.ge.s32.totalorder %s13_s14, 4   ;;  %s927_s13 = smov %s929_s15 }
 0x584   :  { %12 = sbr.rel (!%p10_p5) target bundleno = 2 (0x2), region = 78 }

</bundles_post_ra>
